<compile_context>
chip_gen: v7x
topology: tpu7x:2x2x1
jax: 0.10.0
libtpu: 0.0.40
codegen_flags: <defaults>
</compile_context>

<pallas_src>
import jax
import jax.numpy as jnp
from jax.experimental import pallas as pl
from jax.experimental.pallas import tpu as pltpu

F_IN = 256      # input / output feature dim (already lane-aligned)
H1 = 128        # 100 padded to 128
H2 = 128        # 20 padded to 128
TB_MAX = 2048   # max rows per grid step (double-buffered tiles ~= 6 MiB, safe on v7x)


def ae_kernel(x_ref, w1_ref, w2_ref, w3_ref, w4_ref, o_ref):
    # Cast to bf16 inside the kernel (cheap VPU work next to 4 matmuls) instead of
    # a separate XLA pass over x in HBM.
    x = x_ref[...].astype(jnp.bfloat16)
    h = jnp.dot(x, w1_ref[...], preferred_element_type=jnp.float32)
    h = jnp.maximum(h, 0.0).astype(jnp.bfloat16)          # encoder ReLU 1
    h = jnp.dot(h, w2_ref[...], preferred_element_type=jnp.float32)
    h = jnp.maximum(h, 0.0).astype(jnp.bfloat16)          # encoder ReLU 2 (latent)
    h = jnp.dot(h, w3_ref[...], preferred_element_type=jnp.float32)
    h = jnp.maximum(h, 0.0).astype(jnp.bfloat16)          # decoder ReLU
    o_ref[...] = jnp.dot(h, w4_ref[...],
                         preferred_element_type=jnp.float32).astype(o_ref.dtype)


def _round_up(x, m):
    return ((x + m - 1) // m) * m


def _auto_tb(B):
    """Pick a batch tile: single tile for tiny B, otherwise big tiles with an
    EVEN number of grid steps (>= 2) so v7x's two TensorCores stay balanced."""
    if B <= 256:
        return _round_up(max(B, 8), 8)
    n_steps = max(2, 2 * pl.cdiv(B, 2 * TB_MAX))   # even, >= 2
    return _round_up(pl.cdiv(B, n_steps), 256)


def ae_relu_small_forward(x, w1, w2, w3, w4, *, tb=None, out_dtype=jnp.bfloat16):
    """x: [B, 256] (f32 or bf16); w_i pre-padded/transposed bf16.
    Returns [B, 256] in `out_dtype` (default bf16; pass jnp.float32 if the
    consumer needs f32 and accept the extra HBM traffic)."""
    B, F = x.shape
    assert F == F_IN
    if tb is None:
        tb = _auto_tb(B)

    grid_n = pl.cdiv(B, tb)
    b_pad = grid_n * tb
    padded = b_pad != B
    if padded:
        # Fallback only for ragged B; the common path (B % tb == 0) is copy-free.
        x = jnp.pad(x, ((0, b_pad - B), (0, 0)))

    x_bytes = x.dtype.itemsize
    o_bytes = jnp.dtype(out_dtype).itemsize
    w_bytes = sum(int(w.size) * w.dtype.itemsize for w in (w1, w2, w3, w4))
    cost = pl.CostEstimate(
        flops=2 * b_pad * (F_IN * H1 + H1 * H2 + H2 * H1 + H1 * F_IN),
        transcendentals=0,
        bytes_accessed=b_pad * F_IN * (x_bytes + o_bytes) + w_bytes,
    )

    batch_spec = lambda: pl.BlockSpec((tb, F_IN), lambda i: (i, 0))
    # Constant-index weight blocks -> weights stay resident in VMEM across steps.
    resident = lambda shape: pl.BlockSpec(shape, lambda i: (0, 0))

    out = pl.pallas_call(
        ae_kernel,
        out_shape=jax.ShapeDtypeStruct((b_pad, F_IN), out_dtype),
        grid=(grid_n,),
        in_specs=[
            batch_spec(),
            resident((F_IN, H1)),
            resident((H1, H2)),
            resident((H2, H1)),
            resident((H1, F_IN)),
        ],
        out_specs=batch_spec(),
        compiler_params=pltpu.CompilerParams(
            dimension_semantics=("parallel",),
            # generous vs. actual use (<10 MiB/step at tb=2048 incl. intermediates);
            # stays under v7x's 64 MiB physical VMEM
            vmem_limit_bytes=40 * 1024 * 1024,
        ),
        cost_estimate=cost,
    )(x, w1, w2, w3, w4)
    return out[:B] if padded else out


def init_linear_weight(key, out_features, in_features):
    """Mimic PyTorch nn.Linear default init (kaiming uniform, bound=1/sqrt(in)).
    Returns the raw [out, in] f32 weight."""
    bound = 1.0 / (in_features ** 0.5)
    return jax.random.uniform(
        key, (out_features, in_features), jnp.float32, minval=-bound, maxval=bound
    )


def prep_weight(w, in_pad, out_pad):
    """[out, in] f32 -> transposed, zero-padded [in_pad, out_pad] bf16."""
    out_f, in_f = w.shape
    wt = jnp.pad(w.T, ((0, in_pad - in_f), (0, out_pad - out_f)))
    return wt.astype(jnp.bfloat16)


def reference_forward(x, w1, w2, w3, w4):
    """Plain-JAX reference using the same bf16-in / f32-accumulate chain."""
    h = jnp.dot(x.astype(jnp.bfloat16), w1, preferred_element_type=jnp.float32)
    h = jnp.maximum(h, 0.0).astype(jnp.bfloat16)
    h = jnp.dot(h, w2, preferred_element_type=jnp.float32)
    h = jnp.maximum(h, 0.0).astype(jnp.bfloat16)
    h = jnp.dot(h, w3, preferred_element_type=jnp.float32)
    h = jnp.maximum(h, 0.0).astype(jnp.bfloat16)
    return jnp.dot(h, w4, preferred_element_type=jnp.float32)


if __name__ == "__main__":
    key = jax.random.PRNGKey(0)
    kx, k1, k2, k3, k4 = jax.random.split(key, 5)

    B = 1024  # small demo that still exercises a 2-step "parallel" grid (tb=512)
    x = jax.random.normal(kx, (B, F_IN), jnp.float32)

    # Raw PyTorch-layout weights, then pad/transpose/cast for the kernel.
    w1_raw = init_linear_weight(k1, 100, 256)   # encoder Linear(256 -> 100)
    w2_raw = init_linear_weight(k2, 20, 100)    # encoder Linear(100 -> 20)
    w3_raw = init_linear_weight(k3, 100, 20)    # decoder Linear(20 -> 100)
    w4_raw = init_linear_weight(k4, 256, 100)   # decoder Linear(100 -> 256)

    w1 = prep_weight(w1_raw, F_IN, H1)   # [256, 128]
    w2 = prep_weight(w2_raw, H1, H2)     # [128, 128]
    w3 = prep_weight(w3_raw, H2, H1)     # [128, 128]
    w4 = prep_weight(w4_raw, H1, F_IN)   # [128, 256]

    out = jax.block_until_ready(ae_relu_small_forward(x, w1, w2, w3, w4))
    ref = reference_forward(x, w1, w2, w3, w4)
    assert out.shape == (B, F_IN) and out.dtype == jnp.bfloat16
    assert jnp.allclose(out.astype(jnp.float32), ref, atol=3e-2, rtol=3e-2)

    # Ragged batch: exercises the pad/slice fallback (B % tb != 0).
    Br = 300
    out_r = jax.block_until_ready(ae_relu_small_forward(x[:Br], w1, w2, w3, w4))
    assert out_r.shape == (Br, F_IN)
    assert jnp.allclose(out_r.astype(jnp.float32), ref[:Br], atol=3e-2, rtol=3e-2)

    print("KERNEL_OK")
</pallas_src>

<mosaic_0001>
module attributes {stable_mosaic.version = 11 : i64} {
  func.func @ae_kernel(%arg0: i32, %arg1: memref<512x256xf32, #tpu.memory_space<vmem>>, %arg2: memref<256x128xbf16, #tpu.memory_space<vmem>>, %arg3: memref<128x128xbf16, #tpu.memory_space<vmem>>, %arg4: memref<128x128xbf16, #tpu.memory_space<vmem>>, %arg5: memref<128x256xbf16, #tpu.memory_space<vmem>>, %arg6: memref<512x256xbf16, #tpu.memory_space<vmem>>) attributes {dimension_semantics = [#tpu.dimension_semantics<parallel>], iteration_bounds = array<i64: 2>, scalar_prefetch = 0 : i64, scratch_operands = 0 : i64, tpu.core_type = #tpu.core_type<tc>, window_params = [{transform_indices = @transform_0, window_bounds = array<i64: 512, 256>}, {pipeline_mode = #tpu.pipeline_mode<synchronous>, transform_indices = @transform_1, window_bounds = array<i64: 256, 128>}, {pipeline_mode = #tpu.pipeline_mode<synchronous>, transform_indices = @transform_2, window_bounds = array<i64: 128, 128>}, {pipeline_mode = #tpu.pipeline_mode<synchronous>, transform_indices = @transform_3, window_bounds = array<i64: 128, 128>}, {pipeline_mode = #tpu.pipeline_mode<synchronous>, transform_indices = @transform_4, window_bounds = array<i64: 128, 256>}, {transform_indices = @transform_5, window_bounds = array<i64: 512, 256>}]} {
    %c0 = arith.constant 0 : index
    %c0_0 = arith.constant 0 : index
    %0 = vector.load %arg1[%c0, %c0_0] : memref<512x256xf32, #tpu.memory_space<vmem>>, vector<512x256xf32>
    %1 = arith.truncf %0 : vector<512x256xf32> to vector<512x256xbf16>
    %c0_1 = arith.constant 0 : index
    %c0_2 = arith.constant 0 : index
    %2 = vector.load %arg2[%c0_1, %c0_2] : memref<256x128xbf16, #tpu.memory_space<vmem>>, vector<256x128xbf16>
    %cst = arith.constant dense<0.000000e+00> : vector<512x128xf32>
    %3 = tpu.matmul %1, %2, %cst {dimension_numbers = #tpu.dot_dimension_numbers<[1], [0], [0], [1], [0, 0, 1, 1], [], []>} : vector<512x256xbf16>, vector<256x128xbf16>, vector<512x128xf32> -> vector<512x128xf32>
    %cst_3 = arith.constant 0.000000e+00 : f32
    %4 = vector.broadcast %cst_3 : f32 to vector<512x128xf32>
    %5 = arith.maximumf %3, %4 : vector<512x128xf32>
    %6 = arith.truncf %5 : vector<512x128xf32> to vector<512x128xbf16>
    %c0_4 = arith.constant 0 : index
    %c0_5 = arith.constant 0 : index
    %7 = vector.load %arg3[%c0_4, %c0_5] : memref<128x128xbf16, #tpu.memory_space<vmem>>, vector<128x128xbf16>
    %cst_6 = arith.constant dense<0.000000e+00> : vector<512x128xf32>
    %8 = tpu.matmul %6, %7, %cst_6 {dimension_numbers = #tpu.dot_dimension_numbers<[1], [0], [0], [1], [0, 0, 1, 1], [], []>} : vector<512x128xbf16>, vector<128x128xbf16>, vector<512x128xf32> -> vector<512x128xf32>
    %cst_7 = arith.constant 0.000000e+00 : f32
    %9 = vector.broadcast %cst_7 : f32 to vector<512x128xf32>
    %10 = arith.maximumf %8, %9 : vector<512x128xf32>
    %11 = arith.truncf %10 : vector<512x128xf32> to vector<512x128xbf16>
    %c0_8 = arith.constant 0 : index
    %c0_9 = arith.constant 0 : index
    %12 = vector.load %arg4[%c0_8, %c0_9] : memref<128x128xbf16, #tpu.memory_space<vmem>>, vector<128x128xbf16>
    %cst_10 = arith.constant dense<0.000000e+00> : vector<512x128xf32>
    %13 = tpu.matmul %11, %12, %cst_10 {dimension_numbers = #tpu.dot_dimension_numbers<[1], [0], [0], [1], [0, 0, 1, 1], [], []>} : vector<512x128xbf16>, vector<128x128xbf16>, vector<512x128xf32> -> vector<512x128xf32>
    %cst_11 = arith.constant 0.000000e+00 : f32
    %14 = vector.broadcast %cst_11 : f32 to vector<512x128xf32>
    %15 = arith.maximumf %13, %14 : vector<512x128xf32>
    %16 = arith.truncf %15 : vector<512x128xf32> to vector<512x128xbf16>
    %c0_12 = arith.constant 0 : index
    %c0_13 = arith.constant 0 : index
    %17 = vector.load %arg5[%c0_12, %c0_13] : memref<128x256xbf16, #tpu.memory_space<vmem>>, vector<128x256xbf16>
    %cst_14 = arith.constant dense<0.000000e+00> : vector<512x256xf32>
    %18 = tpu.matmul %16, %17, %cst_14 {dimension_numbers = #tpu.dot_dimension_numbers<[1], [0], [0], [1], [0, 0, 1, 1], [], []>} : vector<512x128xbf16>, vector<128x256xbf16>, vector<512x256xf32> -> vector<512x256xf32>
    %19 = arith.truncf %18 : vector<512x256xf32> to vector<512x256xbf16>
    %c0_15 = arith.constant 0 : index
    %c0_16 = arith.constant 0 : index
    %20 = vector.load %arg6[%c0_15, %c0_16] : memref<512x256xbf16, #tpu.memory_space<vmem>>, vector<512x256xbf16>
    tpu.vector_store %arg6[%c0_15, %c0_16], %19 {strides = array<i32>} : memref<512x256xbf16, #tpu.memory_space<vmem>>, vector<512x256xbf16>,
    return
  }
  func.func @transform_0(%arg0: i32) -> (i32, i32) {
    %c0_i32 = arith.constant 0 : i32
    %c0_i32_0 = arith.constant 0 : i32
    return %arg0, %c0_i32 : i32, i32
  }
  func.func @transform_1(%arg0: i32) -> (i32, i32) {
    %c0_i32 = arith.constant 0 : i32
    %c0_i32_0 = arith.constant 0 : i32
    %c0_i32_1 = arith.constant 0 : i32
    return %c0_i32, %c0_i32_0 : i32, i32
  }
  func.func @transform_2(%arg0: i32) -> (i32, i32) {
    %c0_i32 = arith.constant 0 : i32
    %c0_i32_0 = arith.constant 0 : i32
    %c0_i32_1 = arith.constant 0 : i32
    return %c0_i32, %c0_i32_0 : i32, i32
  }
  func.func @transform_3(%arg0: i32) -> (i32, i32) {
    %c0_i32 = arith.constant 0 : i32
    %c0_i32_0 = arith.constant 0 : i32
    %c0_i32_1 = arith.constant 0 : i32
    return %c0_i32, %c0_i32_0 : i32, i32
  }
  func.func @transform_4(%arg0: i32) -> (i32, i32) {
    %c0_i32 = arith.constant 0 : i32
    %c0_i32_0 = arith.constant 0 : i32
    %c0_i32_1 = arith.constant 0 : i32
    return %c0_i32, %c0_i32_0 : i32, i32
  }
  func.func @transform_5(%arg0: i32) -> (i32, i32) {
    %c0_i32 = arith.constant 0 : i32
    %c0_i32_0 = arith.constant 0 : i32
    return %arg0, %c0_i32 : i32, i32
  }
}

</mosaic_0001>

<bundles_post_ra>
// kernel: tpu_custom_call.1
= control target key start
LH: loop header
LB: loop body
LE: loop exit
PB: predicated region body
PF: predicated region fallthrough
CT: control target
= control target key end

     0   :  { %10 = vsyncpa [#allocation3], 0  ;;  %s4342_s0 = inlined_call_operand.hbm [shape: f32[1024,256], index: 0, kind: input, shape index: {}]   ;;  %s4343_s1 = inlined_call_operand.hbm [shape: bf16[256,128], index: 1, kind: input, shape index: {}]   ;;  %s4344_s2 = inlined_call_operand.hbm [shape: bf16[128,128], index: 2, kind: input, shape index: {}]   ;;  %s4345_s3 = inlined_call_operand.hbm [shape: bf16[128,128], index: 3, kind: input, shape index: {}]   ;;  %s4346_s4 = inlined_call_operand.hbm [shape: bf16[128,256], index: 4, kind: input, shape index: {}]   ;;  %s4347_s5 = inlined_call_operand.hbm [shape: bf16[1024,256], index: 5, kind: output, shape index: {}]  }
   0x1   :  { %12 = vsyncpa [#allocation3 + $0x1], 0 }
   0x2   :  { %13 = vsyncpa [#allocation6], 0 }
   0x3   :  { %14 = vsyncpa [#allocation9], 0 }
   0x4   :  { %15 = vsyncpa [#allocation4], 0 }
   0x5   :  { %17 = vsyncpa [#allocation4 + $0x1], 0  ;;  %s3806_s18 = smov 0   ;;  %s3808_s19 = smov 0  }
   0x6   :  { %s3810_s20 = smov 0   ;;  %s3812_s21 = smov 0  }
   0x7 LB: > { %s3827_s22 = sadd.s32 4294967295, %s3759_s21   ;;  %s2931_s23 = sadd.s32 4294967294, %s3759_s21   ;;  %s3759_s21 = sphi %s3812_s21, %s4370_s21   ;;  %s3755_s20 = sphi %s3810_s20, %s4369_s20   ;;  %s3751_s19 = sphi %s3808_s19, %s4368_s19   ;;  %s3747_s18 = sphi %s3806_s18, %s4367_s18  }
   0x8   : > { %p43_p0 = scmp.ne.s32.totalorder %s3751_s19, %s3747_s18  ;;  %p4348_p1 = scmp.eq.s32.totalorder %s3827_s22, 0 }
   0x9   : > { %p157_p3 = scmp.eq.s32.totalorder %s2931_s23, 1  ;;  %p2932_p5 = scmp.ge.s32.totalorder %s3759_s21, 1 }
   0xa   : > { %p3836_p4 = por %p4348_p1, %p43_p0  ;;  %p164_p7 = scmp.lt.s32.totalorder %s3759_s21, 3 }
   0xb   : > { %p3841_p6 = por %p157_p3, %p43_p0  ;;  %s3761_s27 = smov [#allocation5]  }
   0xc   : > { %s4351_s24 = scalar_select %p3836_p4, 1, 0 }
   0xd   : > { %s4352_s25 = scalar_select %p3841_p6, 1, 0 }
   0xe   : > { %p3846_p8 = pnand %p2932_p5, %p164_p7  ;;  %s176_s28 = sshll.u32 %s3761_s27, 4  ;;  %s3850_s28 = int_to_ptr.vmem [resolvable:$true] %s176_s28 }
   0xf   : > { %s3762_s30 = smov [#allocation8]   ;;  %s3763_s7 = smov [#allocation7]  }
  0x10   : > { %s4353_s26 = scalar_select %p3846_p8, 1, 0 }
  0x11   : > { %p3411_p9 = pneg %p3846_p8  ;;  %s202_s6 = sshll.u32 %s3762_s30, 4  ;;  %s3861_s6 = int_to_ptr.vmem [resolvable:$true] %s202_s6 }
  0x12   : > { %s3863_s8 = sshll.u32 %s3763_s7, 4  ;;  %s3543_s11 = scalar_lea.hbm %s4343_s1, 2048  ;;  %s190_s8 = int_to_ptr.vmem [resolvable:$true] %s3863_s8 }
  0x13   : > { %p3857_p11 = pnand %p3411_p9, %p4348_p1  ;;  %p3544_p12 = scmp.ne.s32.totalorder %s4343_s1, %s3543_s11 }
  0x14   : > { %p3550_p5 = scmp.lt.u32.totalorder %s3543_s11, %s4343_s1 }
  0x15   : > { %p3873_p13 = pneg %p3857_p11 }
  0x17   : > { %p3546_p0 = pnand %p3873_p13, %p3544_p12 }
  0x19   : > { %p3547_p3 = pneg %p3546_p0 }
  0x1b   : > { %p3552_p7 = pnand %p3550_p5, %p3547_p3 }
  0x1d   : > { %3555 = shalt.err (!%p3552_p7)
}
  0x1e   : > { %s3556_s17 = scalar_lea.vmem %s3850_s28, 2048  ;;  %p3564_p2 = scmp.lt.s32.totalorder %s3850_s28, %s3850_s28 }
  0x1f   : > { %p3557_p9 = scmp.ne.s32.totalorder %s3850_s28, %s3556_s17  ;;  %p3565_p6 = scmp.lt.s32.totalorder %s3556_s17, %s3556_s17 }
  0x21   : > { %p3559_p10 = pnand %p3557_p9, %p3873_p13  ;;  %p3566_p12 = por %p3565_p6, %p3564_p2 }
  0x23   : > { %p3560_p1 = pneg %p3559_p10 }
  0x25   : > { %p3567_p0 = pnand %p3566_p12, %p3560_p1 }
  0x27   : > { %3570 = shalt.err (!%p3567_p0)
}
  0x28   : > { %s3764_s23 = smov 64   ;;  %s3765_s27 = smov 4  }
  0x29   : > { %3414 = dma.hbm_to_vmem [thread:$0]  (!%p3857_p11), %s4343_s1, 2048, %s3850_s28, [#allocation6], %s3764_s23, %s3764_s23, %s3765_s27  }
  0x2a   : > { %s3571_s11 = scalar_lea.hbm %s4345_s3, 1024 }
  0x2b   : > { %p3572_p1 = scmp.ne.s32.totalorder %s4345_s3, %s3571_s11  ;;  %p3578_p10 = scmp.lt.u32.totalorder %s3571_s11, %s4345_s3 }
  0x2d   : > { %p3574_p2 = pnand %p3572_p1, %p3873_p13 }
  0x2f   : > { %p3575_p6 = pneg %p3574_p2 }
  0x31   : > { %p3580_p3 = pnand %p3578_p10, %p3575_p6 }
  0x33   : > { %3583 = shalt.err (!%p3580_p3)
}
  0x34   : > { %s3584_s28 = scalar_lea.vmem %s3861_s6, 1024  ;;  %p3592_p12 = scmp.lt.s32.totalorder %s3861_s6, %s3861_s6 }
  0x35   : > { %p3585_p5 = scmp.ne.s32.totalorder %s3861_s6, %s3584_s28  ;;  %p3593_p0 = scmp.lt.s32.totalorder %s3584_s28, %s3584_s28 }
  0x37   : > { %p3587_p7 = pnand %p3585_p5, %p3873_p13  ;;  %p3594_p1 = por %p3593_p0, %p3592_p12 }
  0x39   : > { %p3588_p9 = pneg %p3587_p7 }
  0x3b   : > { %p3595_p2 = pnand %p3594_p1, %p3588_p9 }
  0x3d   : > { %3598 = shalt.err (!%p3595_p2)
}
  0x3e   : > { %3420 = dma.hbm_to_vmem [thread:$0]  (!%p3857_p11), %s4345_s3, 1024, %s3861_s6, [#allocation9], %s3764_s23, %s3764_s23, %s3765_s27  }
  0x3f   : > { %s3599_s10 = scalar_lea.hbm %s4344_s2, 1024 }
  0x40   : > { %p3600_p6 = scmp.ne.s32.totalorder %s4344_s2, %s3599_s10  ;;  %p3606_p5 = scmp.lt.u32.totalorder %s3599_s10, %s4344_s2 }
  0x42   : > { %p3602_p10 = pnand %p3600_p6, %p3873_p13 }
  0x44   : > { %p3603_p3 = pneg %p3602_p10 }
  0x46   : > { %p3608_p7 = pnand %p3606_p5, %p3603_p3 }
  0x48   : > { %3611 = shalt.err (!%p3608_p7)
}
  0x49   : > { %s3612_s16 = scalar_lea.vmem %s190_s8, 1024  ;;  %p3620_p1 = scmp.lt.s32.totalorder %s190_s8, %s190_s8 }
  0x4a   : > { %p3613_p9 = scmp.ne.s32.totalorder %s190_s8, %s3612_s16  ;;  %p3621_p2 = scmp.lt.s32.totalorder %s3612_s16, %s3612_s16 }
  0x4c   : > { %p3615_p12 = pnand %p3613_p9, %p3873_p13  ;;  %p3622_p4 = por %p3621_p2, %p3620_p1 }
  0x4e   : > { %p3616_p0 = pneg %p3615_p12 }
  0x50   : > { %p3623_p8 = pnand %p3622_p4, %p3616_p0 }
  0x52   : > { %3626 = shalt.err (!%p3623_p8)
}
  0x53   : > { %3417 = dma.hbm_to_vmem [thread:$0]  (!%p3857_p11), %s4344_s2, 1024, %s190_s8, [#allocation6], %s3764_s23, %s3764_s23, %s3765_s27  }
  0x54   : > { %s3766_s17 = smov [#allocation10]   ;;  %s3627_s10 = scalar_lea.hbm %s4346_s4, 2048 }
  0x55   : > { %s215_s30 = sshll.u32 %s3766_s17, 4  ;;  %p3628_p4 = scmp.ne.s32.totalorder %s4346_s4, %s3627_s10  ;;  %s216_s30 = int_to_ptr.vmem [resolvable:$true] %s215_s30 }
  0x56   : > { %p3634_p10 = scmp.lt.u32.totalorder %s3627_s10, %s4346_s4 }
  0x57   : > { %p3630_p8 = pnand %p3628_p4, %p3873_p13 }
  0x59   : > { %p3631_p6 = pneg %p3630_p8 }
  0x5b   : > { %p3636_p3 = pnand %p3634_p10, %p3631_p6 }
  0x5d   : > { %3639 = shalt.err (!%p3636_p3)
}
  0x5e   : > { %s3640_s8 = scalar_lea.vmem %s216_s30, 2048  ;;  %p3648_p12 = scmp.lt.s32.totalorder %s216_s30, %s216_s30 }
  0x5f   : > { %p3641_p5 = scmp.ne.s32.totalorder %s216_s30, %s3640_s8  ;;  %p3649_p0 = scmp.lt.s32.totalorder %s3640_s8, %s3640_s8 }
  0x61   : > { %p3643_p7 = pnand %p3641_p5, %p3873_p13  ;;  %p3650_p1 = por %p3649_p0, %p3648_p12 }
  0x63   : > { %p3644_p9 = pneg %p3643_p7 }
  0x65   : > { %p3651_p2 = pnand %p3650_p1, %p3644_p9 }
  0x67   : > { %3654 = shalt.err (!%p3651_p2)
}
  0x68   : > { %s3767_s23 = smov 128   ;;  %s3768_s14 = smov 8  }
  0x69   : > { %3423 = dma.hbm_to_vmem [thread:$0]  (!%p3857_p11), %s4346_s4, 2048, %s216_s30, [#allocation9], %s3767_s23, %s3767_s23, %s3768_s14  }
  0x6a   : > { %s3964_s6 = sadd.s32 1, %s3759_s21   ;;  %s30_s17 = sadd.s32 1, %s3755_s20 }
  0x6b   : > { %s27_s28 = ssub.s32 %s3759_s21, %s3964_s6  ;;  %p37_p4 = scmp.ne.s32.totalorder %s3755_s20, %s3751_s19 }
  0x6c   : > { %p28_p13 = scmp.eq.s32.totalorder %s27_s28, 0  ;;  %p38_p8 = scmp.eq.s32.totalorder %s3759_s21, 0 }
  0x6d   : > { %p4356_p10 = scmp.eq.s32.totalorder %s3827_s22, 1  ;;  %p3436_p5 = scmp.lt.s32.totalorder %s3759_s21, 2 }
  0x6e   : > { %s3973_s7 = scalar_select %p28_p13, %s3755_s20, %s30_s17  }
  0x6f   : > { %p39_p6 = por %p38_p8, %p37_p4  ;;  %p3977_p3 = por %p4356_p10, %p37_p4 }
  0x70   : > { %s229_s29 = sand.u32 1, %s3755_s20   ;;  %s3068_s30 = sshll.u32 %s3759_s21, 14 }
  0x71   : > { %s2938_s10 = sshll.u32 %s229_s29, 10  ;;  %s3987_s13 = scalar_lea.hbm %s4342_s0, %s3068_s30 }
  0x72   : > { %s233_s15 = scalar_lea.vmem [#allocation2], %s2938_s10  ;;  %p3991_p11 = pnand %p3436_p5, %p39_p6 }
  0x73   : > { %s241_s8 = sshll.u32 %s233_s15, 4  ;;  %s3995_s14 = scalar_lea.sflag [#allocation3], %s229_s29  ;;  %s3989_s8 = int_to_ptr.vmem [resolvable:$true] %s241_s8 }
  0x74   : > { %s3655_s27 = scalar_lea.hbm %s3987_s13, 16384  ;;  %p3657_p9 = pneg %p3991_p11 }
  0x75   : > { %p3656_p7 = scmp.ne.s32.totalorder %s3987_s13, %s3655_s27  ;;  %s3660_s17 = scalar_lea.hbm %s4342_s0, 32768 }
  0x76   : > { %p3661_p1 = scmp.lt.u32.totalorder %s3987_s13, %s4342_s0  ;;  %p3662_p2 = scmp.lt.u32.totalorder %s3660_s17, %s3655_s27 }
  0x77   : > { %p3658_p12 = pnand %p3657_p9, %p3656_p7  ;;  %p3664_p4 = scmp.lt.u32.totalorder %s3655_s27, %s3987_s13 }
  0x78   : > { %p3663_p13 = por %p3662_p2, %p3661_p1 }
  0x79   : > { %p3659_p0 = pneg %p3658_p12 }
  0x7a   : > { %p3665_p8 = por %p3664_p4, %p3663_p13 }
  0x7c   : > { %p3666_p6 = pnand %p3665_p8, %p3659_p0 }
  0x7e   : > { %3669 = shalt.err (!%p3666_p6)
}
  0x7f   : > { %s3670_s29 = scalar_lea.vmem %s3989_s8, 16384  ;;  %s3769_s11 = smov [#allocation2]  }
  0x80   : > { %p3671_p10 = scmp.ne.s32.totalorder %s3989_s8, %s3670_s29  ;;  %s3675_s12 = sshll.u32 %s3769_s11, 4  ;;  %s3676_s12 = int_to_ptr.vmem [resolvable:$false] %s3675_s12 }
  0x81   : > { %s3677_s15 = scalar_lea.vmem %s3676_s12, 32768  ;;  %p3678_p12 = scmp.lt.s32.totalorder %s3989_s8, %s3676_s12 }
  0x82   : > { %p3673_p5 = pnand %p3671_p10, %p3657_p9  ;;  %p3679_p1 = scmp.lt.s32.totalorder %s3677_s15, %s3670_s29 }
  0x84   : > { %p3674_p7 = pneg %p3673_p5  ;;  %p3680_p2 = por %p3679_p1, %p3678_p12 }
  0x86   : > { %p3681_p13 = pnand %p3680_p2, %p3674_p7 }
  0x88   : > { %3684 = shalt.err (!%p3681_p13)
}
  0x89   : > { %s3770_s27 = smov 256   ;;  %s3771_s16 = smov 16  }
  0x8a   : > { %3427 = dma.hbm_to_vmem [thread:$0]  (!%p3991_p11), %s3987_s13, 16384, %s3989_s8, %s3995_s14, %s3770_s27, %s3770_s27, %s3771_s16  }
  0x8b   : > { %p4359_p9 = scmp.ne.s32.totalorder %s4353_s26, 0 }
  0x8c   : > { %s4026_s28 = sand.u32 (!%p4359_p9), 1, %s3751_s19   ;;  %p4360_p0 = scmp.ne.s32.totalorder (!%p4359_p9), %s4351_s24, 0 }
  0x8d   : > { %253 = sbr.rel (%p4359_p9) target bundleno = 1366 (0x556), region = 40  ;;  %s2943_s17 = sshll.u32 (!%p4359_p9), %s4026_s28, 10 }
  0x8e   : > { %s256_s10 = scalar_lea.sflag (!%p4359_p9), [#allocation3], %s4026_s28  ;;  %s4030_s30 = scalar_lea.vmem (!%p4359_p9), [#allocation2], %s2943_s17 }
  0x94   : > { %3730 = dma.done.wait (%p4360_p0), %s256_s10, 16384  }
  0x95   : > { %3732 = vsyncadd (%p4360_p0), %s256_s10, 4294950912  ;;  %p4361_p11 = scmp.eq.s32.totalorder %s3827_s22, 0 }
  0x97   : > { %3734 = dma.done.wait (%p4361_p11), [#allocation6], 3072   ;;  %p4362_p4 = pmov %p4361_p11 }
  0x99   : > { %3736 = vsyncadd (%p4362_p4), [#allocation6], 4294964224  ;;  %p4363_p8 = pmov %p4362_p4 }
  0x9a   : > { %p4364_p6 = pmov %p4362_p4 }
  0x9b   : > { %3738 = dma.done.wait (%p4363_p8), [#allocation9], 3072  }
  0x9c   : > { %3740 = vsyncadd (%p4364_p6), [#allocation9], 4294964224  ;;  %v3772_v0 = vmov 0   ;;  %v3487_v1 = vld [vmem:[#allocation5] sm:$0xff]   ;;  %v3488_v2 = vld [vmem:[#allocation5 + $0x8] sm:$0xff]   ;;  %s2948_s24 = sshll.u32 %s4026_s28, 9 }
  0x9d   : > { %625 = vmatprep.subr.bf16.mxu0 %v3772_v0  ;;  %v3489_v3 = vld [vmem:[#allocation5 + $0x10] sm:$0xff]   ;;  %v3490_v4 = vld [vmem:[#allocation5 + $0x18] sm:$0xff]   ;;  %v3491_v5 = vld [vmem:[#allocation5 + $0x20] sm:$0xff]   ;;  %s4225_s26 = scalar_lea.vmem [#allocation11], %s2948_s24  ;;  %s3134_s13 = sshll.u32 %s3827_s22, 13 }
  0x9e   : > { %626 = vmatpush1.bf16.msra.mxu0 %v3487_v1  ;;  %v306_v6 = vld [vmem:[%s4030_s30 + $0x8] sm:$0xff]  ;;  %v308_v7 = vld [vmem:[%s4030_s30 + $0x18] sm:$0xff]  ;;  %v3493_v10 = vld [vmem:[#allocation5 + $0x30] sm:$0xff]   ;;  %s2820_s8 = sshll.u32 %s4225_s26, 4  ;;  %s4294_s29 = scalar_lea.hbm %s4347_s5, %s3134_s13  ;;  %s4296_s8 = int_to_ptr.vmem [resolvable:$true] %s2820_s8 }
  0x9f   : > { %627 = vmatprep.subr.bf16.mxu0 %v3772_v0  ;;  %v434_v8 = vpack.c.bf16 %v308_v7, %v306_v6  ;;  %v3492_v9 = vld [vmem:[#allocation5 + $0x28] sm:$0xff]   ;;  %v3494_v11 = vld [vmem:[#allocation5 + $0x38] sm:$0xff]   ;;  %v3495_v12 = vld [vmem:[#allocation5 + $0x40] sm:$0xff]   ;;  %s2806_s11 = scalar_lea.sflag [#allocation4], %s4026_s28  ;;  %s3685_s22 = scalar_lea.vmem %s4296_s8, 8192 }
  0xa0   : > { %v3496_v13 = vld [vmem:[#allocation5 + $0x48] sm:$0xff]   ;;  %v3497_v14 = vld [vmem:[#allocation5 + $0x50] sm:$0xff]   ;;  %v3498_v15 = vld [vmem:[#allocation5 + $0x58] sm:$0xff]   ;;  %p3686_p10 = scmp.ne.s32.totalorder %s4296_s8, %s3685_s22  ;;  %s3773_s12 = smov [#allocation11]  }
  0xa1   : > { %657 = vmatprep.mubr.bf16.mxu0 %v434_v8  ;;  %v3499_v16 = vld [vmem:[#allocation5 + $0x60] sm:$0xff]   ;;  %v3500_v17 = vld [vmem:[#allocation5 + $0x68] sm:$0xff]   ;;  %v3501_v18 = vld [vmem:[#allocation5 + $0x70] sm:$0xff]   ;;  %s3689_s15 = sshll.u32 %s3773_s12, 4  ;;  %s3690_s15 = int_to_ptr.vmem [resolvable:$false] %s3689_s15 }
  0xa2   : > { %628 = vmatpush1.bf16.msra.mxu0 %v3488_v2  ;;  %v3502_v19 = vld [vmem:[#allocation5 + $0x78] sm:$0xff]   ;;  %v305_v20 = vld [vmem:[%s4030_s30] sm:$0xff]  ;;  %v307_v21 = vld [vmem:[%s4030_s30 + $0x10] sm:$0xff]  ;;  %p3687_p5 = pnand %p3686_p10, %p3977_p3  ;;  %s3691_s27 = scalar_lea.vmem %s3690_s15, 16384 }
  0xa3   : > { %629 = vmatprep.subr.bf16.mxu0 %v3772_v0  ;;  %v310_v22 = vld [vmem:[%s4030_s30 + $0x28] sm:$0xff]  ;;  %v312_v23 = vld [vmem:[%s4030_s30 + $0x38] sm:$0xff]  ;;  %v433_v24 = vpack.c.bf16 %v307_v21, %v305_v20  ;;  %v309_v26 = vld [vmem:[%s4030_s30 + $0x20] sm:$0xff]  ;;  %p3692_p12 = scmp.lt.s32.totalorder %s4296_s8, %s3690_s15  ;;  %p3693_p1 = scmp.lt.s32.totalorder %s3691_s27, %s3685_s22 }
  0xa4   : > { %v436_v25 = vpack.c.bf16 %v312_v23, %v310_v22  ;;  %v311_v27 = vld [vmem:[%s4030_s30 + $0x30] sm:$0xff]  ;;  %v314_v28 = vld [vmem:[%s4030_s30 + $0x48] sm:$0xff]  ;;  %v316_v29 = vld [vmem:[%s4030_s30 + $0x58] sm:$0xff]  ;;  %p3688_p7 = pneg %p3687_p5 }
  0xa5   : > { %v435_v30 = vpack.c.bf16 %v311_v27, %v309_v26  ;;  %v438_v31 = vpack.c.bf16 %v316_v29, %v314_v28  ;;  %v313_v32 = vld [vmem:[%s4030_s30 + $0x40] sm:$0xff]  ;;  %v315_v33 = vld [vmem:[%s4030_s30 + $0x50] sm:$0xff]  ;;  %v318_v34 = vld [vmem:[%s4030_s30 + $0x68] sm:$0xff]  ;;  %p3694_p2 = por %p3693_p1, %p3692_p12 }
  0xa6   : > { %630 = vmatpush1.bf16.msra.mxu0 %v3489_v3  ;;  %v320_v35 = vld [vmem:[%s4030_s30 + $0x78] sm:$0xff]  ;;  %v437_v36 = vpack.c.bf16 %v315_v33, %v313_v32  ;;  %v317_v38 = vld [vmem:[%s4030_s30 + $0x60] sm:$0xff]  ;;  %v319_v39 = vld [vmem:[%s4030_s30 + $0x70] sm:$0xff] }
  0xa7   : > { %631 = vmatprep.subr.bf16.mxu0 %v3772_v0  ;;  %v440_v37 = vpack.c.bf16 %v320_v35, %v318_v34  ;;  %v322_v40 = vld [vmem:[%s4030_s30 + $0x88] sm:$0xff]  ;;  %v324_v41 = vld [vmem:[%s4030_s30 + $0x98] sm:$0xff]  ;;  %v439_v42 = vpack.c.bf16 %v319_v39, %v317_v38  ;;  %v321_v44 = vld [vmem:[%s4030_s30 + $0x80] sm:$0xff]  ;;  %p3695_p13 = pnand %p3694_p2, %p3688_p7 }
  0xa8   : > { %v442_v43 = vpack.c.bf16 %v324_v41, %v322_v40  ;;  %v323_v45 = vld [vmem:[%s4030_s30 + $0x90] sm:$0xff]  ;;  %v326_v46 = vld [vmem:[%s4030_s30 + $0xa8] sm:$0xff]  ;;  %v328_v47 = vld [vmem:[%s4030_s30 + $0xb8] sm:$0xff] }
  0xa9   : > { %v441_v48 = vpack.c.bf16 %v323_v45, %v321_v44  ;;  %v444_v49 = vpack.c.bf16 %v328_v47, %v326_v46  ;;  %v325_v50 = vld [vmem:[%s4030_s30 + $0xa0] sm:$0xff]  ;;  %v327_v51 = vld [vmem:[%s4030_s30 + $0xb0] sm:$0xff]  ;;  %v330_v52 = vld [vmem:[%s4030_s30 + $0xc8] sm:$0xff] }
  0xaa   : > { %632 = vmatpush1.bf16.msra.mxu0 %v3490_v4  ;;  %v332_v53 = vld [vmem:[%s4030_s30 + $0xd8] sm:$0xff]  ;;  %v443_v54 = vpack.c.bf16 %v327_v51, %v325_v50  ;;  %v329_v56 = vld [vmem:[%s4030_s30 + $0xc0] sm:$0xff]  ;;  %v331_v57 = vld [vmem:[%s4030_s30 + $0xd0] sm:$0xff] }
  0xab   : > { %633 = vmatprep.subr.bf16.mxu0 %v3772_v0  ;;  %v446_v55 = vpack.c.bf16 %v332_v53, %v330_v52  ;;  %v334_v58 = vld [vmem:[%s4030_s30 + $0xe8] sm:$0xff]  ;;  %v336_v59 = vld [vmem:[%s4030_s30 + $0xf8] sm:$0xff]  ;;  %v445_v60 = vpack.c.bf16 %v331_v57, %v329_v56  ;;  %v333_v62 = vld [vmem:[%s4030_s30 + $0xe0] sm:$0xff] }
  0xac   : > { %v448_v61 = vpack.c.bf16 %v336_v59, %v334_v58  ;;  %v335_v63 = vld [vmem:[%s4030_s30 + $0xf0] sm:$0xff]  ;;  %v338_v1 = vld [vmem:[%s4030_s30 + $0x108] sm:$0xff]  ;;  %v340_v2 = vld [vmem:[%s4030_s30 + $0x118] sm:$0xff] }
  0xad   : > { %v447_v3 = vpack.c.bf16 %v335_v63, %v333_v62  ;;  %v450_v4 = vpack.c.bf16 %v340_v2, %v338_v1  ;;  %v339_v6 = vld [vmem:[%s4030_s30 + $0x110] sm:$0xff]  ;;  %v342_v7 = vld [vmem:[%s4030_s30 + $0x128] sm:$0xff]  ;;  %v344_v8 = vld [vmem:[%s4030_s30 + $0x138] sm:$0xff] }
  0xae   : > { %634 = vmatpush1.bf16.msra.mxu0 %v3491_v5  ;;  %v337_v5 = vld [vmem:[%s4030_s30 + $0x100] sm:$0xff]  ;;  %v3506_v20 = vld [vmem:[#allocation7 + $0x18] sm:$0xff]   ;;  %v347_v22 = vld [vmem:[%s4030_s30 + $0x150] sm:$0xff] }
  0xaf   : > { %635 = vmatprep.subr.bf16.mxu0 %v3772_v0  ;;  %v345_v21 = vld [vmem:[%s4030_s30 + $0x140] sm:$0xff]  ;;  %v350_v23 = vld [vmem:[%s4030_s30 + $0x168] sm:$0xff]  ;;  %v351_v29 = vld [vmem:[%s4030_s30 + $0x170] sm:$0xff] }
  0xb0   : > { %v3507_v27 = vld [vmem:[#allocation7 + $0x20] sm:$0xff]   ;;  %v3508_v33 = vld [vmem:[#allocation7 + $0x28] sm:$0xff]   ;;  %v3509_v35 = vld [vmem:[#allocation7 + $0x30] sm:$0xff]  }
  0xb1   : > { %v349_v28 = vld [vmem:[%s4030_s30 + $0x160] sm:$0xff]  ;;  %v358_v38 = vld [vmem:[%s4030_s30 + $0x1a8] sm:$0xff]  ;;  %v360_v39 = vld [vmem:[%s4030_s30 + $0x1b8] sm:$0xff] }
  0xb2   : > { %636 = vmatpush1.bf16.msra.mxu0 %v3492_v9  ;;  %v449_v9 = vpack.c.bf16 %v339_v6, %v337_v5  ;;  %v455_v32 = vpack.c.bf16 %v351_v29, %v349_v28  ;;  %v3510_v41 = vld [vmem:[#allocation7 + $0x38] sm:$0xff]   ;;  %v359_v44 = vld [vmem:[%s4030_s30 + $0x1b0] sm:$0xff]  ;;  %v362_v45 = vld [vmem:[%s4030_s30 + $0x1c8] sm:$0xff] }
  0xb3   : > { %637 = vmatprep.subr.bf16.mxu0 %v3772_v0  ;;  %v364_v46 = vld [vmem:[%s4030_s30 + $0x1d8] sm:$0xff]  ;;  %v363_v50 = vld [vmem:[%s4030_s30 + $0x1d0] sm:$0xff]  ;;  %v366_v51 = vld [vmem:[%s4030_s30 + $0x1e8] sm:$0xff] }
  0xb4   : > { %v368_v52 = vld [vmem:[%s4030_s30 + $0x1f8] sm:$0xff]  ;;  %v367_v56 = vld [vmem:[%s4030_s30 + $0x1f0] sm:$0xff]  ;;  %v370_v57 = vld [vmem:[%s4030_s30 + $0x208] sm:$0xff] }
  0xb5   : > { %v372_v58 = vld [vmem:[%s4030_s30 + $0x218] sm:$0xff]  ;;  %v371_v62 = vld [vmem:[%s4030_s30 + $0x210] sm:$0xff]  ;;  %v374_v63 = vld [vmem:[%s4030_s30 + $0x228] sm:$0xff] }
  0xb6   : > { %638 = vmatpush1.bf16.msra.mxu0 %v3493_v10  ;;  %v452_v10 = vpack.c.bf16 %v344_v8, %v342_v7  ;;  %v376_v1 = vld [vmem:[%s4030_s30 + $0x238] sm:$0xff]  ;;  %v375_v5 = vld [vmem:[%s4030_s30 + $0x230] sm:$0xff]  ;;  %v378_v6 = vld [vmem:[%s4030_s30 + $0x248] sm:$0xff] }
  0xb7   : > { %639 = vmatprep.subr.bf16.mxu0 %v3772_v0  ;;  %v380_v7 = vld [vmem:[%s4030_s30 + $0x258] sm:$0xff]  ;;  %v389_v28 = vld [vmem:[%s4030_s30 + $0x2a0] sm:$0xff]  ;;  %v391_v29 = vld [vmem:[%s4030_s30 + $0x2b0] sm:$0xff] }
  0xba   : > { %640 = vmatpush1.bf16.msra.mxu0 %v3494_v11  ;;  %v3503_v11 = vld [vmem:[#allocation7] sm:$0xff]  }
  0xbb   : > { %641 = vmatprep.subr.bf16.mxu0 %v3772_v0  ;;  %3215 = vmatprep.subr.bf16.mxu1 %v3503_v11 }
  0xbc   : > { %3216 = vmatpush3.bf16.msra.mxu1 %v3503_v11  ;;  %v379_v11 = vld [vmem:[%s4030_s30 + $0x250] sm:$0xff] }
  0xbe   : > { %642 = vmatpush1.bf16.msra.mxu0 %v3495_v12  ;;  %v3504_v12 = vld [vmem:[#allocation7 + $0x8] sm:$0xff]  }
  0xbf   : > { %643 = vmatprep.subr.bf16.mxu0 %v3772_v0  ;;  %3217 = vmatprep.subr.bf16.mxu1 %v3504_v12 }
  0xc0   : > { %3218 = vmatpush3.bf16.msra.mxu1 %v3504_v12  ;;  %v382_v12 = vld [vmem:[%s4030_s30 + $0x268] sm:$0xff] }
  0xc2   : > { %644 = vmatpush1.bf16.msra.mxu0 %v3496_v13  ;;  %v341_v13 = vld [vmem:[%s4030_s30 + $0x120] sm:$0xff] }
  0xc3   : > { %645 = vmatprep.subr.bf16.mxu0 %v3772_v0 }
  0xc6   : > { %646 = vmatpush1.bf16.msra.mxu0 %v3497_v14  ;;  %v343_v14 = vld [vmem:[%s4030_s30 + $0x130] sm:$0xff] }
  0xc7   : > { %647 = vmatprep.subr.bf16.mxu0 %v3772_v0 }
  0xca   : > { %648 = vmatpush1.bf16.msra.mxu0 %v3498_v15  ;;  %v346_v15 = vld [vmem:[%s4030_s30 + $0x148] sm:$0xff] }
  0xcb   : > { %649 = vmatprep.subr.bf16.mxu0 %v3772_v0 }
  0xce   : > { %650 = vmatpush1.bf16.msra.mxu0 %v3499_v16  ;;  %v348_v16 = vld [vmem:[%s4030_s30 + $0x158] sm:$0xff] }
  0xcf   : > { %651 = vmatprep.subr.bf16.mxu0 %v3772_v0 }
  0xd2   : > { %652 = vmatpush1.bf16.msra.mxu0 %v3500_v17  ;;  %v451_v17 = vpack.c.bf16 %v343_v14, %v341_v13  ;;  %v384_v13 = vld [vmem:[%s4030_s30 + $0x278] sm:$0xff] }
  0xd3   : > { %653 = vmatprep.subr.bf16.mxu0 %v3772_v0 }
  0xd6   : > { %654 = vmatpush1.bf16.msra.mxu0 %v3501_v18  ;;  %v454_v18 = vpack.c.bf16 %v348_v16, %v346_v15  ;;  %v472_v15 = vpack.c.bf16 %v384_v13, %v382_v12  ;;  %v381_v16 = vld [vmem:[%s4030_s30 + $0x260] sm:$0xff] }
  0xd7   : > { %655 = vmatprep.subr.bf16.mxu0 %v3772_v0 }
  0xda   : > { %656 = vmatpush1.bf16.msra.mxu0 %v3502_v19  ;;  %v3505_v19 = vld [vmem:[#allocation7 + $0x10] sm:$0xff]  }
  0xdb   : > { %3219 = vmatprep.subr.bf16.mxu1 %v3505_v19 }
  0xdc   : > { %3220 = vmatpush3.bf16.msra.mxu1 %v3505_v19  ;;  %v388_v19 = vld [vmem:[%s4030_s30 + $0x298] sm:$0xff] }
  0xdd   : > { %658 = vmatmul.mubr.bf16.vlgmr.msra.gmra.mrb[0].mxu0 %v433_v24  ;;  %v352_v24 = vld [vmem:[%s4030_s30 + $0x178] sm:$0xff]  ;;  %3221 = vmatprep.subr.bf16.mxu1 %v3506_v20 }
  0xde   : > { %665 = vmatprep.mubr.bf16.mxu0 %v436_v25  ;;  %v453_v25 = vpack.c.bf16 %v347_v22, %v345_v21  ;;  %v456_v26 = vpack.c.bf16 %v352_v24, %v350_v23  ;;  %v385_v22 = vld [vmem:[%s4030_s30 + $0x280] sm:$0xff]  ;;  %v387_v23 = vld [vmem:[%s4030_s30 + $0x290] sm:$0xff]  ;;  %v390_v24 = vld [vmem:[%s4030_s30 + $0x2a8] sm:$0xff] }
  0xe0   : > { %3222 = vmatpush3.bf16.msra.mxu1 %v3506_v20 }
  0xe1   : > { %3223 = vmatprep.subr.bf16.mxu1 %v3507_v27 }
  0xe4   : > { %3224 = vmatpush3.bf16.msra.mxu1 %v3507_v27 }
  0xe5   : > { %666 = vmatmul.mubr.bf16.gmra.mrb[4].mxu0 %v435_v30  ;;  %v354_v30 = vld [vmem:[%s4030_s30 + $0x188] sm:$0xff]  ;;  %3225 = vmatprep.subr.bf16.mxu1 %v3508_v33 }
  0xe6   : > { %673 = vmatprep.mubr.bf16.mxu0 %v438_v31  ;;  %v356_v31 = vld [vmem:[%s4030_s30 + $0x198] sm:$0xff] }
  0xe7   : > { %v458_v34 = vpack.c.bf16 %v356_v31, %v354_v30  ;;  %v394_v30 = vld [vmem:[%s4030_s30 + $0x2c8] sm:$0xff]  ;;  %v396_v31 = vld [vmem:[%s4030_s30 + $0x2d8] sm:$0xff] }
  0xe8   : > { %3226 = vmatpush3.bf16.msra.mxu1 %v3508_v33  ;;  %v478_v33 = vpack.c.bf16 %v396_v31, %v394_v30  ;;  %v428_v30 = vld [vmem:[%s4030_s30 + $0x3d8] sm:$0xff] }
  0xe9   : > { %3227 = vmatprep.subr.bf16.mxu1 %v3509_v35 }
  0xec   : > { %3228 = vmatpush3.bf16.msra.mxu1 %v3509_v35  ;;  %v395_v35 = vld [vmem:[%s4030_s30 + $0x2d0] sm:$0xff] }
  0xed   : > { %674 = vmatmul.mubr.bf16.gmra.mrb[8].mxu0 %v437_v36  ;;  %v353_v36 = vld [vmem:[%s4030_s30 + $0x180] sm:$0xff]  ;;  %3229 = vmatprep.subr.bf16.mxu1 %v3510_v41 }
  0xee   : > { %681 = vmatprep.mubr.bf16.mxu0 %v440_v37  ;;  %v355_v37 = vld [vmem:[%s4030_s30 + $0x190] sm:$0xff] }
  0xef   : > { %v457_v40 = vpack.c.bf16 %v355_v37, %v353_v36  ;;  %v398_v36 = vld [vmem:[%s4030_s30 + $0x2e8] sm:$0xff]  ;;  %v400_v37 = vld [vmem:[%s4030_s30 + $0x2f8] sm:$0xff] }
  0xf0   : > { %3230 = vmatpush3.bf16.msra.mxu1 %v3510_v41  ;;  %v399_v41 = vld [vmem:[%s4030_s30 + $0x2f0] sm:$0xff] }
  0xf5   : > { %682 = vmatmul.mubr.bf16.gmra.mrb[12].mxu0 %v439_v42  ;;  %v460_v42 = vpack.c.bf16 %v360_v39, %v358_v38  ;;  %v480_v39 = vpack.c.bf16 %v400_v37, %v398_v36 }
  0xf6   : > { %689 = vmatprep.mubr.bf16.mxu0 %v442_v43  ;;  %v357_v43 = vld [vmem:[%s4030_s30 + $0x1a0] sm:$0xff] }
  0xf7   : > { %v459_v47 = vpack.c.bf16 %v359_v44, %v357_v43  ;;  %v404_v43 = vld [vmem:[%s4030_s30 + $0x318] sm:$0xff] }
  0xfd   : > { %690 = vmatmul.mubr.bf16.gmra.mrb[16].mxu0 %v441_v48  ;;  %v462_v48 = vpack.c.bf16 %v364_v46, %v362_v45  ;;  %v401_v46 = vld [vmem:[%s4030_s30 + $0x300] sm:$0xff] }
  0xfe   : > { %697 = vmatprep.mubr.bf16.mxu0 %v444_v49  ;;  %v361_v49 = vld [vmem:[%s4030_s30 + $0x1c0] sm:$0xff] }
  0xff   : > { %v461_v53 = vpack.c.bf16 %v363_v50, %v361_v49  ;;  %v408_v49 = vld [vmem:[%s4030_s30 + $0x338] sm:$0xff] }
 0x105   : > { %698 = vmatmul.mubr.bf16.gmra.mrb[20].mxu0 %v443_v54  ;;  %v464_v54 = vpack.c.bf16 %v368_v52, %v366_v51  ;;  %v405_v52 = vld [vmem:[%s4030_s30 + $0x320] sm:$0xff] }
 0x106   : > { %705 = vmatprep.mubr.bf16.mxu0 %v446_v55  ;;  %v365_v55 = vld [vmem:[%s4030_s30 + $0x1e0] sm:$0xff] }
 0x107   : > { %v463_v59 = vpack.c.bf16 %v367_v56, %v365_v55  ;;  %v412_v55 = vld [vmem:[%s4030_s30 + $0x358] sm:$0xff] }
 0x10d   : > { %706 = vmatmul.mubr.bf16.gmra.mrb[24].mxu0 %v445_v60  ;;  %v466_v60 = vpack.c.bf16 %v372_v58, %v370_v57  ;;  %v409_v58 = vld [vmem:[%s4030_s30 + $0x340] sm:$0xff] }
 0x10e   : > { %713 = vmatprep.mubr.bf16.mxu0 %v448_v61  ;;  %v369_v61 = vld [vmem:[%s4030_s30 + $0x200] sm:$0xff] }
 0x10f   : > { %v465_v2 = vpack.c.bf16 %v371_v62, %v369_v61  ;;  %v416_v61 = vld [vmem:[%s4030_s30 + $0x378] sm:$0xff] }
 0x115   : > { %714 = vmatmul.mubr.bf16.gmra.mrb[28].mxu0 %v447_v3  ;;  %v468_v3 = vpack.c.bf16 %v376_v1, %v374_v63  ;;  %v413_v1 = vld [vmem:[%s4030_s30 + $0x360] sm:$0xff] }
 0x116   : > { %721 = vmatprep.mubr.bf16.mxu0 %v450_v4  ;;  %v373_v4 = vld [vmem:[%s4030_s30 + $0x220] sm:$0xff] }
 0x117   : > { %v467_v8 = vpack.c.bf16 %v375_v5, %v373_v4  ;;  %v420_v4 = vld [vmem:[%s4030_s30 + $0x398] sm:$0xff] }
 0x11d   : > { %722 = vmatmul.mubr.bf16.gmra.mrb[32].mxu0 %v449_v9  ;;  %v470_v9 = vpack.c.bf16 %v380_v7, %v378_v6 }
 0x11e   : > { %729 = vmatprep.mubr.bf16.mxu0 %v452_v10  ;;  %v377_v10 = vld [vmem:[%s4030_s30 + $0x240] sm:$0xff] }
 0x11f   : > { %v469_v14 = vpack.c.bf16 %v379_v11, %v377_v10 }
 0x125   : > { %730 = vmatmul.mubr.bf16.gmra.mrb[36].mxu0 %v451_v17  ;;  %v383_v17 = vld [vmem:[%s4030_s30 + $0x270] sm:$0xff] }
 0x126   : > { %737 = vmatprep.mubr.bf16.mxu0 %v454_v18  ;;  %v386_v18 = vld [vmem:[%s4030_s30 + $0x288] sm:$0xff]  ;;  %v471_v20 = vpack.c.bf16 %v383_v17, %v381_v16  ;;  %v424_v17 = vld [vmem:[%s4030_s30 + $0x3b8] sm:$0xff] }
 0x127   : > { %v474_v21 = vpack.c.bf16 %v388_v19, %v386_v18  ;;  %v422_v16 = vld [vmem:[%s4030_s30 + $0x3a8] sm:$0xff] }
 0x12d   : > { %738 = vmatmul.mubr.bf16.gmra.mrb[40].mxu0 %v453_v25  ;;  %v392_v25 = vld [vmem:[%s4030_s30 + $0x2b8] sm:$0xff] }
 0x12e   : > { %745 = vmatprep.mubr.bf16.mxu0 %v456_v26  ;;  %v473_v26 = vpack.c.bf16 %v387_v23, %v385_v22  ;;  %v476_v27 = vpack.c.bf16 %v392_v25, %v390_v24  ;;  %v492_v22 = vpack.c.bf16 %v424_v17, %v422_v16 }
 0x135   : > { %746 = vmatmul.mubr.bf16.gmra.mrb[44].mxu0 %v455_v32  ;;  %v475_v32 = vpack.c.bf16 %v391_v29, %v389_v28  ;;  %v423_v28 = vld [vmem:[%s4030_s30 + $0x3b0] sm:$0xff]  ;;  %v426_v29 = vld [vmem:[%s4030_s30 + $0x3c8] sm:$0xff] }
 0x136   : > { %753 = vmatprep.mubr.bf16.mxu0 %v458_v34  ;;  %v393_v34 = vld [vmem:[%s4030_s30 + $0x2c0] sm:$0xff] }
 0x137   : > { %v477_v38 = vpack.c.bf16 %v395_v35, %v393_v34  ;;  %v494_v35 = vpack.c.bf16 %v428_v30, %v426_v29  ;;  %v3513_v30 = vld [vmem:[#allocation8 + $0x10] sm:$0xff]  }
 0x13d   : > { %754 = vmatmul.mubr.bf16.gmra.mrb[48].mxu0 %v457_v40  ;;  %v397_v40 = vld [vmem:[%s4030_s30 + $0x2e0] sm:$0xff] }
 0x13e   : > { %761 = vmatprep.mubr.bf16.mxu0 %v460_v42  ;;  %v402_v42 = vld [vmem:[%s4030_s30 + $0x308] sm:$0xff]  ;;  %v479_v44 = vpack.c.bf16 %v399_v41, %v397_v40  ;;  %v425_v40 = vld [vmem:[%s4030_s30 + $0x3c0] sm:$0xff]  ;;  %v427_v41 = vld [vmem:[%s4030_s30 + $0x3d0] sm:$0xff] }
 0x13f   : > { %v482_v45 = vpack.c.bf16 %v404_v43, %v402_v42  ;;  %v430_v42 = vld [vmem:[%s4030_s30 + $0x3e8] sm:$0xff]  ;;  %v432_v43 = vld [vmem:[%s4030_s30 + $0x3f8] sm:$0xff] }
 0x145   : > { %762 = vmatmul.mubr.bf16.gmra.mrb[52].mxu0 %v459_v47  ;;  %v403_v47 = vld [vmem:[%s4030_s30 + $0x310] sm:$0xff] }
 0x146   : > { %769 = vmatprep.mubr.bf16.mxu0 %v462_v48  ;;  %v406_v48 = vld [vmem:[%s4030_s30 + $0x328] sm:$0xff]  ;;  %v481_v50 = vpack.c.bf16 %v403_v47, %v401_v46  ;;  %v493_v46 = vpack.c.bf16 %v427_v41, %v425_v40 }
 0x147   : > { %v484_v51 = vpack.c.bf16 %v408_v49, %v406_v48  ;;  %v496_v48 = vpack.c.bf16 %v432_v43, %v430_v42 }
 0x14d   : > { %770 = vmatmul.mubr.bf16.gmra.mrb[56].mxu0 %v461_v53  ;;  %v407_v53 = vld [vmem:[%s4030_s30 + $0x330] sm:$0xff] }
 0x14e   : > { %777 = vmatprep.mubr.bf16.mxu0 %v464_v54  ;;  %v410_v54 = vld [vmem:[%s4030_s30 + $0x348] sm:$0xff]  ;;  %v483_v56 = vpack.c.bf16 %v407_v53, %v405_v52  ;;  %v429_v53 = vld [vmem:[%s4030_s30 + $0x3e0] sm:$0xff] }
 0x14f   : > { %v486_v57 = vpack.c.bf16 %v412_v55, %v410_v54  ;;  %v431_v54 = vld [vmem:[%s4030_s30 + $0x3f0] sm:$0xff] }
 0x155   : > { %778 = vmatmul.mubr.bf16.gmra.mrb[60].mxu0 %v463_v59  ;;  %v411_v59 = vld [vmem:[%s4030_s30 + $0x350] sm:$0xff] }
 0x156   : > { %785 = vmatprep.mubr.bf16.mxu0 %v466_v60  ;;  %v414_v60 = vld [vmem:[%s4030_s30 + $0x368] sm:$0xff]  ;;  %v485_v62 = vpack.c.bf16 %v411_v59, %v409_v58 }
 0x157   : > { %v488_v63 = vpack.c.bf16 %v416_v61, %v414_v60 }
 0x15d   : > { %786 = vmatmul.mubr.bf16.gmra.mrb[64].mxu0 %v465_v2  ;;  %v415_v2 = vld [vmem:[%s4030_s30 + $0x370] sm:$0xff] }
 0x15e   : > { %793 = vmatprep.mubr.bf16.mxu0 %v468_v3  ;;  %v418_v3 = vld [vmem:[%s4030_s30 + $0x388] sm:$0xff]  ;;  %v487_v7 = vpack.c.bf16 %v415_v2, %v413_v1 }
 0x165   : > { %794 = vmatmul.mubr.bf16.gmra.mrb[68].mxu0 %v467_v8 }
 0x166   : > { %801 = vmatprep.mubr.bf16.mxu0 %v470_v9  ;;  %v490_v9 = vpack.c.bf16 %v420_v4, %v418_v3 }
 0x16d   : > { %802 = vmatmul.mubr.bf16.gmra.mrb[72].mxu0 %v469_v14  ;;  %v417_v14 = vld [vmem:[%s4030_s30 + $0x380] sm:$0xff] }
 0x16e   : > { %809 = vmatprep.mubr.bf16.mxu0 %v472_v15  ;;  %v419_v15 = vld [vmem:[%s4030_s30 + $0x390] sm:$0xff] }
 0x175   : > { %810 = vmatmul.mubr.bf16.gmra.mrb[76].mxu0 %v471_v20  ;;  %v489_v20 = vpack.c.bf16 %v419_v15, %v417_v14  ;;  %v3512_v15 = vld [vmem:[#allocation8 + $0x8] sm:$0xff]  }
 0x176   : > { %817 = vmatprep.mubr.bf16.mxu0 %v474_v21 }
 0x17d   : > { %818 = vmatmul.mubr.bf16.gmra.mrb[80].mxu0 %v473_v26 }
 0x17e   : > { %825 = vmatprep.mubr.bf16.mxu0 %v476_v27  ;;  %v421_v27 = vld [vmem:[%s4030_s30 + $0x3a0] sm:$0xff] }
 0x185   : > { %826 = vmatmul.mubr.bf16.gmra.mrb[84].mxu0 %v475_v32 }
 0x186   : > { %833 = vmatprep.mubr.bf16.mxu0 %v478_v33  ;;  %v491_v33 = vpack.c.bf16 %v423_v28, %v421_v27 }
 0x18d   : > { %834 = vmatmul.mubr.bf16.gmra.mrb[88].mxu0 %v477_v38 }
 0x18e   : > { %841 = vmatprep.mubr.bf16.mxu0 %v480_v39 }
 0x195   : > { %842 = vmatmul.mubr.bf16.gmra.mrb[92].mxu0 %v479_v44 }
 0x196   : > { %849 = vmatprep.mubr.bf16.mxu0 %v482_v45 }
 0x19d   : > { %850 = vmatmul.mubr.bf16.gmra.mrb[96].mxu0 %v481_v50 }
 0x19e   : > { %857 = vmatprep.mubr.bf16.mxu0 %v484_v51 }
 0x1a5   : > { %858 = vmatmul.mubr.bf16.gmra.mrb[100].mxu0 %v483_v56 }
 0x1a6   : > { %865 = vmatprep.mubr.bf16.mxu0 %v486_v57  ;;  %v495_v57 = vpack.c.bf16 %v431_v54, %v429_v53 }
 0x1ad   : > { %866 = vmatmul.mubr.bf16.gmra.mrb[104].mxu0 %v485_v62 }
 0x1ae   : > { %873 = vmatprep.mubr.bf16.mxu0 %v488_v63  ;;  %v3511_v63 = vld [vmem:[#allocation8] sm:$0xff]  }
 0x1af   : > { %3295 = vmatprep.subr.bf16.mxu1 %v3511_v63 }
 0x1b0   : > { %v659_v5 = vpop.f32.mrb[0].mxu0 }
 0x1b1   : > { %v661_v6 = vpop.f32.mrb[1].mxu0  ;;  %v914_v10 = vmax.f32 %v659_v5, 0.0 }
 0x1b2   : > { %v662_v8 = vpop.f32.mrb[2].mxu0 }
 0x1b3   : > { %v915_v11 = vmax.f32 %v662_v8, 0.0  ;;  %v664_v12 = vpop.f32.mrb[3].mxu0 }
 0x1b5   : > { %874 = vmatmul.mubr.bf16.gmra.mrb[108].mxu0 %v487_v7  ;;  %v978_v13 = vpack.c.bf16 %v915_v11, %v914_v10 }
 0x1b6   : > { %881 = vmatprep.mubr.bf16.mxu0 %v490_v9 }
 0x1b7   : > { %3231 = vmatprep.mubr.bf16.mxu1 %v978_v13 }
 0x1b8   : > { %v667_v18 = vpop.f32.mrb[4].mxu0 }
 0x1b9   : > { %v669_v19 = vpop.f32.mrb[5].mxu0  ;;  %v916_v23 = vmax.f32 %v667_v18, 0.0 }
 0x1ba   : > { %v670_v21 = vpop.f32.mrb[6].mxu0 }
 0x1bb   : > { %v917_v24 = vmax.f32 %v670_v21, 0.0  ;;  %v672_v25 = vpop.f32.mrb[7].mxu0 }
 0x1bd   : > { %v979_v26 = vpack.c.bf16 %v917_v24, %v916_v23  ;;  %882 = vmatmul.mubr.bf16.gmra.mrb[112].mxu0 %v489_v20 }
 0x1be   : > { %889 = vmatprep.mubr.bf16.mxu0 %v492_v22 }
 0x1bf   : > { %3232 = vmatmul.mubr.bf16.vlgmr.msra.gmra.mrb[0].mxu1 %v979_v26 }
 0x1c0   : > { %v675_v31 = vpop.f32.mrb[8].mxu0  ;;  %3296 = vmatpush3.bf16.msra.mxu1 %v3511_v63 }
 0x1c1   : > { %v677_v32 = vpop.f32.mrb[9].mxu0  ;;  %v918_v36 = vmax.f32 %v675_v31, 0.0  ;;  %3297 = vmatprep.subr.bf16.mxu1 %v3512_v15 }
 0x1c2   : > { %v678_v34 = vpop.f32.mrb[10].mxu0 }
 0x1c3   : > { %v919_v37 = vmax.f32 %v678_v34, 0.0  ;;  %v680_v38 = vpop.f32.mrb[11].mxu0 }
 0x1c4   : > { %3298 = vmatpush3.bf16.msra.mxu1 %v3512_v15 }
 0x1c5   : > { %v980_v39 = vpack.c.bf16 %v919_v37, %v918_v36  ;;  %890 = vmatmul.mubr.bf16.gmra.mrb[116].mxu0 %v491_v33  ;;  %3299 = vmatprep.subr.bf16.mxu1 %v3513_v30 }
 0x1c6   : > { %897 = vmatprep.mubr.bf16.mxu0 %v494_v35 }
 0x1c7   : > { %3235 = vmatprep.mubr.bf16.mxu1 %v980_v39 }
 0x1c8   : > { %v683_v44 = vpop.f32.mrb[12].mxu0  ;;  %3300 = vmatpush3.bf16.msra.mxu1 %v3513_v30 }
 0x1c9   : > { %v685_v45 = vpop.f32.mrb[13].mxu0  ;;  %v920_v49 = vmax.f32 %v683_v44, 0.0 }
 0x1ca   : > { %v686_v47 = vpop.f32.mrb[14].mxu0  ;;  %v3514_v45 = vld [vmem:[#allocation8 + $0x18] sm:$0xff]  }
 0x1cb   : > { %v921_v50 = vmax.f32 %v686_v47, 0.0  ;;  %v688_v51 = vpop.f32.mrb[15].mxu0  ;;  %3301 = vmatprep.subr.bf16.mxu1 %v3514_v45 }
 0x1cc   : > { %3302 = vmatpush3.bf16.msra.mxu1 %v3514_v45 }
 0x1cd   : > { %v981_v52 = vpack.c.bf16 %v921_v50, %v920_v49  ;;  %898 = vmatmul.mubr.bf16.gmra.mrb[120].mxu0 %v493_v46 }
 0x1ce   : > { %905 = vmatprep.mubr.bf16.mxu0 %v496_v48 }
 0x1cf   : > { %3236 = vmatmul.mubr.bf16.gmra.mrb[4].mxu1 %v981_v52 }
 0x1d0   : > { %v691_v55 = vpop.f32.mrb[16].mxu0 }
 0x1d1   : > { %v693_v56 = vpop.f32.mrb[17].mxu0  ;;  %v922_v59 = vmax.f32 %v691_v55, 0.0 }
 0x1d2   : > { %v694_v58 = vpop.f32.mrb[18].mxu0 }
 0x1d3   : > { %v923_v60 = vmax.f32 %v694_v58, 0.0  ;;  %v696_v61 = vpop.f32.mrb[19].mxu0 }
 0x1d5   : > { %v982_v62 = vpack.c.bf16 %v923_v60, %v922_v59  ;;  %906 = vmatmul.mubr.bf16.gmra.mrb[124].mxu0 %v495_v57  ;;  %v3515_v60 = vld [vmem:[#allocation8 + $0x20] sm:$0xff]  }
 0x1d6   : > { %2036 = vmatprep.mubr.bf16.mxu0 %v3772_v0  ;;  %3303 = vmatprep.subr.bf16.mxu1 %v3515_v60 }
 0x1d7   : > { %3239 = vmatprep.mubr.bf16.mxu1 %v982_v62  ;;  %3304 = vmatpush3.bf16.msra.mxu1 %v3515_v60 }
 0x1d8   : > { %v699_v1 = vpop.f32.mrb[20].mxu0 }
 0x1d9   : > { %v701_v2 = vpop.f32.mrb[21].mxu0  ;;  %v924_v4 = vmax.f32 %v699_v1, 0.0 }
 0x1da   : > { %v702_v3 = vpop.f32.mrb[22].mxu0 }
 0x1db   : > { %v925_v5 = vmax.f32 %v702_v3, 0.0  ;;  %v704_v6 = vpop.f32.mrb[23].mxu0 }
 0x1dd   : > { %v983_v7 = vpack.c.bf16 %v925_v5, %v924_v4 }
 0x1df   : > { %3240 = vmatmul.mubr.bf16.gmra.mrb[8].mxu1 %v983_v7 }
 0x1e0   : > { %v707_v8 = vpop.f32.mrb[24].mxu0 }
 0x1e1   : > { %v709_v9 = vpop.f32.mrb[25].mxu0  ;;  %v926_v11 = vmax.f32 %v707_v8, 0.0 }
 0x1e2   : > { %v710_v10 = vpop.f32.mrb[26].mxu0 }
 0x1e3   : > { %v927_v12 = vmax.f32 %v710_v10, 0.0  ;;  %v712_v13 = vpop.f32.mrb[27].mxu0 }
 0x1e5   : > { %v984_v14 = vpack.c.bf16 %v927_v12, %v926_v11  ;;  %v3516_v12 = vld [vmem:[#allocation8 + $0x28] sm:$0xff]  }
 0x1e6   : > { %3305 = vmatprep.subr.bf16.mxu1 %v3516_v12 }
 0x1e7   : > { %3243 = vmatprep.mubr.bf16.mxu1 %v984_v14  ;;  %3306 = vmatpush3.bf16.msra.mxu1 %v3516_v12 }
 0x1e8   : > { %v715_v16 = vpop.f32.mrb[28].mxu0 }
 0x1e9   : > { %v717_v17 = vpop.f32.mrb[29].mxu0  ;;  %v928_v19 = vmax.f32 %v715_v16, 0.0 }
 0x1ea   : > { %v718_v18 = vpop.f32.mrb[30].mxu0 }
 0x1eb   : > { %v929_v20 = vmax.f32 %v718_v18, 0.0  ;;  %v720_v21 = vpop.f32.mrb[31].mxu0 }
 0x1ed   : > { %v985_v22 = vpack.c.bf16 %v929_v20, %v928_v19  ;;  %v3517_v20 = vld [vmem:[#allocation8 + $0x30] sm:$0xff]  }
 0x1ee   : > { %3307 = vmatprep.subr.bf16.mxu1 %v3517_v20 }
 0x1ef   : > { %3244 = vmatmul.mubr.bf16.gmra.mrb[12].mxu1 %v985_v22 }
 0x1f0   : > { %v723_v23 = vpop.f32.mrb[32].mxu0  ;;  %3308 = vmatpush3.bf16.msra.mxu1 %v3517_v20 }
 0x1f1   : > { %v725_v24 = vpop.f32.mrb[33].mxu0  ;;  %v930_v26 = vmax.f32 %v723_v23, 0.0  ;;  %v3518_v23 = vld [vmem:[#allocation8 + $0x38] sm:$0xff]  }
 0x1f2   : > { %v726_v25 = vpop.f32.mrb[34].mxu0  ;;  %3309 = vmatprep.subr.bf16.mxu1 %v3518_v23 }
 0x1f3   : > { %v931_v27 = vmax.f32 %v726_v25, 0.0  ;;  %v728_v28 = vpop.f32.mrb[35].mxu0 }
 0x1f4   : > { %3310 = vmatpush3.bf16.msra.mxu1 %v3518_v23 }
 0x1f5   : > { %v986_v29 = vpack.c.bf16 %v931_v27, %v930_v26 }
 0x1f7   : > { %3247 = vmatprep.mubr.bf16.mxu1 %v986_v29 }
 0x1f8   : > { %v731_v31 = vpop.f32.mrb[36].mxu0 }
 0x1f9   : > { %v733_v32 = vpop.f32.mrb[37].mxu0  ;;  %v932_v34 = vmax.f32 %v731_v31, 0.0 }
 0x1fa   : > { %v734_v33 = vpop.f32.mrb[38].mxu0 }
 0x1fb   : > { %v933_v35 = vmax.f32 %v734_v33, 0.0  ;;  %v736_v36 = vpop.f32.mrb[39].mxu0 }
 0x1fd   : > { %v987_v37 = vpack.c.bf16 %v933_v35, %v932_v34 }
 0x1ff   : > { %3248 = vmatmul.mubr.bf16.gmra.mrb[16].mxu1 %v987_v37 }
 0x200   : > { %v739_v38 = vpop.f32.mrb[40].mxu0 }
 0x201   : > { %v741_v39 = vpop.f32.mrb[41].mxu0  ;;  %v934_v41 = vmax.f32 %v739_v38, 0.0 }
 0x202   : > { %v742_v40 = vpop.f32.mrb[42].mxu0 }
 0x203   : > { %v935_v42 = vmax.f32 %v742_v40, 0.0  ;;  %v744_v43 = vpop.f32.mrb[43].mxu0 }
 0x205   : > { %v988_v44 = vpack.c.bf16 %v935_v42, %v934_v41 }
 0x207   : > { %3251 = vmatprep.mubr.bf16.mxu1 %v988_v44 }
 0x208   : > { %v747_v46 = vpop.f32.mrb[44].mxu0 }
 0x209   : > { %v749_v47 = vpop.f32.mrb[45].mxu0  ;;  %v936_v49 = vmax.f32 %v747_v46, 0.0 }
 0x20a   : > { %v750_v48 = vpop.f32.mrb[46].mxu0 }
 0x20b   : > { %v937_v50 = vmax.f32 %v750_v48, 0.0  ;;  %v752_v51 = vpop.f32.mrb[47].mxu0 }
 0x20d   : > { %v989_v52 = vpack.c.bf16 %v937_v50, %v936_v49 }
 0x20f   : > { %3252 = vmatmul.mubr.bf16.gmra.mrb[20].mxu1 %v989_v52 }
 0x210   : > { %v755_v53 = vpop.f32.mrb[48].mxu0 }
 0x211   : > { %v757_v54 = vpop.f32.mrb[49].mxu0  ;;  %v938_v56 = vmax.f32 %v755_v53, 0.0 }
 0x212   : > { %v758_v55 = vpop.f32.mrb[50].mxu0 }
 0x213   : > { %v939_v57 = vmax.f32 %v758_v55, 0.0  ;;  %v760_v58 = vpop.f32.mrb[51].mxu0 }
 0x215   : > { %v990_v59 = vpack.c.bf16 %v939_v57, %v938_v56 }
 0x217   : > { %3255 = vmatprep.mubr.bf16.mxu1 %v990_v59 }
 0x218   : > { %v763_v61 = vpop.f32.mrb[52].mxu0 }
 0x219   : > { %v765_v62 = vpop.f32.mrb[53].mxu0  ;;  %v940_v1 = vmax.f32 %v763_v61, 0.0 }
 0x21a   : > { %v766_v63 = vpop.f32.mrb[54].mxu0 }
 0x21b   : > { %v941_v2 = vmax.f32 %v766_v63, 0.0  ;;  %v768_v3 = vpop.f32.mrb[55].mxu0 }
 0x21d   : > { %v991_v4 = vpack.c.bf16 %v941_v2, %v940_v1 }
 0x21f   : > { %3256 = vmatmul.mubr.bf16.gmra.mrb[24].mxu1 %v991_v4 }
 0x220   : > { %v771_v5 = vpop.f32.mrb[56].mxu0 }
 0x221   : > { %v773_v6 = vpop.f32.mrb[57].mxu0  ;;  %v942_v8 = vmax.f32 %v771_v5, 0.0 }
 0x222   : > { %v774_v7 = vpop.f32.mrb[58].mxu0 }
 0x223   : > { %v943_v9 = vmax.f32 %v774_v7, 0.0  ;;  %v776_v10 = vpop.f32.mrb[59].mxu0 }
 0x225   : > { %v992_v11 = vpack.c.bf16 %v943_v9, %v942_v8 }
 0x227   : > { %3259 = vmatprep.mubr.bf16.mxu1 %v992_v11 }
 0x228   : > { %v779_v13 = vpop.f32.mrb[60].mxu0 }
 0x229   : > { %v781_v14 = vpop.f32.mrb[61].mxu0  ;;  %v944_v16 = vmax.f32 %v779_v13, 0.0 }
 0x22a   : > { %v782_v15 = vpop.f32.mrb[62].mxu0 }
 0x22b   : > { %v945_v17 = vmax.f32 %v782_v15, 0.0  ;;  %v784_v18 = vpop.f32.mrb[63].mxu0 }
 0x22d   : > { %v993_v19 = vpack.c.bf16 %v945_v17, %v944_v16 }
 0x22f   : > { %3260 = vmatmul.mubr.bf16.gmra.mrb[28].mxu1 %v993_v19 }
 0x230   : > { %v787_v21 = vpop.f32.mrb[64].mxu0 }
 0x231   : > { %v789_v22 = vpop.f32.mrb[65].mxu0  ;;  %v946_v25 = vmax.f32 %v787_v21, 0.0 }
 0x232   : > { %v790_v24 = vpop.f32.mrb[66].mxu0 }
 0x233   : > { %v947_v26 = vmax.f32 %v790_v24, 0.0  ;;  %v792_v27 = vpop.f32.mrb[67].mxu0 }
 0x235   : > { %v994_v28 = vpack.c.bf16 %v947_v26, %v946_v25 }
 0x237   : > { %3263 = vmatprep.mubr.bf16.mxu1 %v994_v28 }
 0x238   : > { %v795_v29 = vpop.f32.mrb[68].mxu0 }
 0x239   : > { %v797_v30 = vpop.f32.mrb[69].mxu0  ;;  %v948_v32 = vmax.f32 %v795_v29, 0.0 }
 0x23a   : > { %v798_v31 = vpop.f32.mrb[70].mxu0 }
 0x23b   : > { %v949_v33 = vmax.f32 %v798_v31, 0.0  ;;  %v800_v34 = vpop.f32.mrb[71].mxu0 }
 0x23d   : > { %v995_v35 = vpack.c.bf16 %v949_v33, %v948_v32 }
 0x23f   : > { %3264 = vmatmul.mubr.bf16.gmra.mrb[32].mxu1 %v995_v35 }
 0x240   : > { %v803_v36 = vpop.f32.mrb[72].mxu0 }
 0x241   : > { %v805_v37 = vpop.f32.mrb[73].mxu0  ;;  %v950_v39 = vmax.f32 %v803_v36, 0.0 }
 0x242   : > { %v806_v38 = vpop.f32.mrb[74].mxu0  ;;  %v4189_v37 = vld [vmem:[#allocation10] ss:$8 sps:$4 sm:$0xff]  }
 0x243   : > { %v951_v40 = vmax.f32 %v806_v38, 0.0  ;;  %v808_v41 = vpop.f32.mrb[75].mxu0  ;;  %v3521_v38 = vld [vmem:[#allocation10 + $0x4] ss:$8 sps:$4 sm:$0xff]  }
 0x244   : > { %2004 = vmatprep.subr.bf16.mxu0 %v3521_v38  ;;  %3375 = vmatprep.subr.bf16.mxu1 %v3521_v38 }
 0x245   : > { %v996_v42 = vpack.c.bf16 %v951_v40, %v950_v39  ;;  %2005 = vmatpush1.bf16.msra.mxu0 %v4189_v37 }
 0x247   : > { %3267 = vmatprep.mubr.bf16.mxu1 %v996_v42 }
 0x248   : > { %v811_v43 = vpop.f32.mrb[76].mxu0 }
 0x249   : > { %v813_v44 = vpop.f32.mrb[77].mxu0  ;;  %v952_v46 = vmax.f32 %v811_v43, 0.0 }
 0x24a   : > { %v814_v45 = vpop.f32.mrb[78].mxu0 }
 0x24b   : > { %v953_v47 = vmax.f32 %v814_v45, 0.0  ;;  %v816_v48 = vpop.f32.mrb[79].mxu0 }
 0x24d   : > { %v997_v49 = vpack.c.bf16 %v953_v47, %v952_v46 }
 0x24f   : > { %3268 = vmatmul.mubr.bf16.gmra.mrb[36].mxu1 %v997_v49 }
 0x250   : > { %v819_v50 = vpop.f32.mrb[80].mxu0 }
 0x251   : > { %v821_v51 = vpop.f32.mrb[81].mxu0  ;;  %v954_v53 = vmax.f32 %v819_v50, 0.0 }
 0x252   : > { %v822_v52 = vpop.f32.mrb[82].mxu0 }
 0x253   : > { %v955_v54 = vmax.f32 %v822_v52, 0.0  ;;  %v824_v55 = vpop.f32.mrb[83].mxu0 }
 0x255   : > { %v998_v56 = vpack.c.bf16 %v955_v54, %v954_v53 }
 0x257   : > { %3271 = vmatprep.mubr.bf16.mxu1 %v998_v56 }
 0x258   : > { %v827_v57 = vpop.f32.mrb[84].mxu0 }
 0x259   : > { %v829_v58 = vpop.f32.mrb[85].mxu0  ;;  %v956_v60 = vmax.f32 %v827_v57, 0.0 }
 0x25a   : > { %v830_v59 = vpop.f32.mrb[86].mxu0 }
 0x25b   : > { %v957_v61 = vmax.f32 %v830_v59, 0.0  ;;  %v832_v62 = vpop.f32.mrb[87].mxu0 }
 0x25d   : > { %v999_v63 = vpack.c.bf16 %v957_v61, %v956_v60 }
 0x25f   : > { %3272 = vmatmul.mubr.bf16.gmra.mrb[40].mxu1 %v999_v63 }
 0x260   : > { %v835_v1 = vpop.f32.mrb[88].mxu0 }
 0x261   : > { %v837_v2 = vpop.f32.mrb[89].mxu0  ;;  %v958_v4 = vmax.f32 %v835_v1, 0.0 }
 0x262   : > { %v838_v3 = vpop.f32.mrb[90].mxu0 }
 0x263   : > { %v959_v5 = vmax.f32 %v838_v3, 0.0  ;;  %v840_v6 = vpop.f32.mrb[91].mxu0 }
 0x265   : > { %v1000_v7 = vpack.c.bf16 %v959_v5, %v958_v4 }
 0x267   : > { %3275 = vmatprep.mubr.bf16.mxu1 %v1000_v7 }
 0x268   : > { %v843_v8 = vpop.f32.mrb[92].mxu0 }
 0x269   : > { %v845_v9 = vpop.f32.mrb[93].mxu0  ;;  %v960_v11 = vmax.f32 %v843_v8, 0.0 }
 0x26a   : > { %v846_v10 = vpop.f32.mrb[94].mxu0 }
 0x26b   : > { %v961_v12 = vmax.f32 %v846_v10, 0.0  ;;  %v848_v13 = vpop.f32.mrb[95].mxu0 }
 0x26d   : > { %v1001_v14 = vpack.c.bf16 %v961_v12, %v960_v11 }
 0x26f   : > { %3276 = vmatmul.mubr.bf16.gmra.mrb[44].mxu1 %v1001_v14 }
 0x270   : > { %v851_v15 = vpop.f32.mrb[96].mxu0 }
 0x271   : > { %v853_v16 = vpop.f32.mrb[97].mxu0  ;;  %v962_v18 = vmax.f32 %v851_v15, 0.0 }
 0x272   : > { %v854_v17 = vpop.f32.mrb[98].mxu0 }
 0x273   : > { %v963_v19 = vmax.f32 %v854_v17, 0.0  ;;  %v856_v20 = vpop.f32.mrb[99].mxu0 }
 0x275   : > { %v1002_v21 = vpack.c.bf16 %v963_v19, %v962_v18 }
 0x277   : > { %3279 = vmatprep.mubr.bf16.mxu1 %v1002_v21 }
 0x278   : > { %v859_v22 = vpop.f32.mrb[100].mxu0 }
 0x279   : > { %v861_v23 = vpop.f32.mrb[101].mxu0  ;;  %v964_v25 = vmax.f32 %v859_v22, 0.0 }
 0x27a   : > { %v862_v24 = vpop.f32.mrb[102].mxu0 }
 0x27b   : > { %v965_v26 = vmax.f32 %v862_v24, 0.0  ;;  %v864_v27 = vpop.f32.mrb[103].mxu0  ;;  %v3522_v24 = vld [vmem:[#allocation10 + $0x10] ss:$8 sps:$4 sm:$0xff]  }
 0x27d   : > { %v1003_v28 = vpack.c.bf16 %v965_v26, %v964_v25  ;;  %v3524_v25 = vld [vmem:[#allocation10 + $0x14] ss:$8 sps:$4 sm:$0xff]  }
 0x27e   : > { %2006 = vmatprep.subr.bf16.mxu0 %v3524_v25 }
 0x27f   : > { %3280 = vmatmul.mubr.bf16.gmra.mrb[48].mxu1 %v1003_v28  ;;  %2007 = vmatpush1.bf16.msra.mxu0 %v3522_v24 }
 0x280   : > { %v867_v29 = vpop.f32.mrb[104].mxu0 }
 0x281   : > { %v869_v30 = vpop.f32.mrb[105].mxu0  ;;  %v966_v32 = vmax.f32 %v867_v29, 0.0 }
 0x282   : > { %v870_v31 = vpop.f32.mrb[106].mxu0 }
 0x283   : > { %v967_v33 = vmax.f32 %v870_v31, 0.0  ;;  %v872_v34 = vpop.f32.mrb[107].mxu0 }
 0x285   : > { %v1004_v35 = vpack.c.bf16 %v967_v33, %v966_v32 }
 0x287   : > { %3283 = vmatprep.mubr.bf16.mxu1 %v1004_v35 }
 0x288   : > { %v875_v36 = vpop.f32.mrb[108].mxu0 }
 0x289   : > { %v877_v39 = vpop.f32.mrb[109].mxu0  ;;  %v968_v41 = vmax.f32 %v875_v36, 0.0 }
 0x28a   : > { %v878_v40 = vpop.f32.mrb[110].mxu0 }
 0x28b   : > { %v969_v42 = vmax.f32 %v878_v40, 0.0  ;;  %v880_v43 = vpop.f32.mrb[111].mxu0 }
 0x28d   : > { %v1005_v44 = vpack.c.bf16 %v969_v42, %v968_v41 }
 0x28f   : > { %3284 = vmatmul.mubr.bf16.gmra.mrb[52].mxu1 %v1005_v44 }
 0x290   : > { %v883_v45 = vpop.f32.mrb[112].mxu0 }
 0x291   : > { %v885_v46 = vpop.f32.mrb[113].mxu0  ;;  %v970_v49 = vmax.f32 %v883_v45, 0.0 }
 0x292   : > { %v886_v47 = vpop.f32.mrb[114].mxu0  ;;  %v3233_v48 = vpop.f32.mrb[0].mxu1 }
 0x293   : > { %v971_v50 = vmax.f32 %v886_v47, 0.0  ;;  %v888_v51 = vpop.f32.mrb[115].mxu0  ;;  %v1108_v52 = vpop.f32.mrb[1].mxu1  ;;  %v1365_v55 = vmax.f32 %v3233_v48, 0.0 }
 0x294   : > { %v3234_v53 = vpop.f32.mrb[2].mxu1  ;;  %v1363_v58 = vmax.f32 %v1108_v52, 0.0 }
 0x295   : > { %v1006_v54 = vpack.c.bf16 %v971_v50, %v970_v49  ;;  %v1366_v56 = vmax.f32 %v3234_v53, 0.0  ;;  %v1111_v57 = vpop.f32.mrb[3].mxu1  ;;  %v3525_v53 = vld [vmem:[#allocation10 + $0x20] ss:$8 sps:$4 sm:$0xff]  }
 0x296   : > { %v1364_v59 = vmax.f32 %v1111_v57, 0.0 }
 0x297   : > { %v1428_v60 = vpack.c.bf16 %v1366_v56, %v1365_v55  ;;  %3287 = vmatprep.mubr.bf16.mxu1 %v1006_v54  ;;  %v3527_v54 = vld [vmem:[#allocation10 + $0x24] ss:$8 sps:$4 sm:$0xff]  }
 0x298   : > { %v1427_v61 = vpack.c.bf16 %v1364_v59, %v1363_v58  ;;  %v891_v62 = vpop.f32.mrb[116].mxu0  ;;  %2008 = vmatprep.subr.bf16.mxu0 %v3527_v54 }
 0x299   : > { %v893_v63 = vpop.f32.mrb[117].mxu0  ;;  %v972_v2 = vmax.f32 %v891_v62, 0.0  ;;  %2009 = vmatpush1.bf16.msra.mxu0 %v3525_v53 }
 0x29a   : > { %v894_v1 = vpop.f32.mrb[118].mxu0 }
 0x29b   : > { %v973_v3 = vmax.f32 %v894_v1, 0.0  ;;  %v896_v4 = vpop.f32.mrb[119].mxu0 }
 0x29d   : > { %v1007_v5 = vpack.c.bf16 %v973_v3, %v972_v2 }
 0x29f   : > { %3288 = vmatmul.mubr.bf16.gmra.mrb[56].mxu1 %v1007_v5 }
 0x2a0   : > { %v899_v6 = vpop.f32.mrb[120].mxu0 }
 0x2a1   : > { %v901_v7 = vpop.f32.mrb[121].mxu0  ;;  %v974_v10 = vmax.f32 %v899_v6, 0.0 }
 0x2a2   : > { %v902_v8 = vpop.f32.mrb[122].mxu0  ;;  %v3237_v9 = vpop.f32.mrb[4].mxu1 }
 0x2a3   : > { %v975_v11 = vmax.f32 %v902_v8, 0.0  ;;  %v904_v12 = vpop.f32.mrb[123].mxu0  ;;  %v1124_v13 = vpop.f32.mrb[5].mxu1  ;;  %v1369_v16 = vmax.f32 %v3237_v9, 0.0 }
 0x2a4   : > { %v3238_v14 = vpop.f32.mrb[6].mxu1  ;;  %v1367_v19 = vmax.f32 %v1124_v13, 0.0  ;;  %v3530_v12 = vld [vmem:[#allocation10 + $0x34] ss:$8 sps:$4 sm:$0xff]  }
 0x2a5   : > { %v1008_v15 = vpack.c.bf16 %v975_v11, %v974_v10  ;;  %v1370_v17 = vmax.f32 %v3238_v14, 0.0  ;;  %v1127_v18 = vpop.f32.mrb[7].mxu1  ;;  %v3528_v11 = vld [vmem:[#allocation10 + $0x30] ss:$8 sps:$4 sm:$0xff]   ;;  %2010 = vmatprep.subr.bf16.mxu0 %v3530_v12 }
 0x2a6   : > { %v1368_v20 = vmax.f32 %v1127_v18, 0.0  ;;  %2011 = vmatpush1.bf16.msra.mxu0 %v3528_v11 }
 0x2a7   : > { %v1430_v21 = vpack.c.bf16 %v1370_v17, %v1369_v16  ;;  %3291 = vmatprep.mubr.bf16.mxu1 %v1008_v15 }
 0x2a8   : > { %v1429_v22 = vpack.c.bf16 %v1368_v20, %v1367_v19  ;;  %v907_v23 = vpop.f32.mrb[124].mxu0 }
 0x2a9   : > { %v909_v26 = vpop.f32.mrb[125].mxu0  ;;  %v976_v28 = vmax.f32 %v907_v23, 0.0  ;;  %v3533_v23 = vld [vmem:[#allocation10 + $0x44] ss:$8 sps:$4 sm:$0xff]  }
 0x2aa   : > { %v910_v27 = vpop.f32.mrb[126].mxu0  ;;  %2012 = vmatprep.subr.bf16.mxu0 %v3533_v23 }
 0x2ab   : > { %v977_v29 = vmax.f32 %v910_v27, 0.0  ;;  %v912_v30 = vpop.f32.mrb[127].mxu0 }
 0x2ad   : > { %v1009_v31 = vpack.c.bf16 %v977_v29, %v976_v28  ;;  %v3536_v28 = vld [vmem:[#allocation10 + $0x54] ss:$8 sps:$4 sm:$0xff]  }
 0x2af   : > { %3292 = vmatmul.mubr.bf16.gmra.mrb[60].mxu1 %v1009_v31 }
 0x2b0   : > { %3311 = vmatprep.mubr.bf16.mxu1 %v1427_v61 }
 0x2b2   : > { %v3241_v32 = vpop.f32.mrb[8].mxu1 }
 0x2b3   : > { %v1140_v33 = vpop.f32.mrb[9].mxu1  ;;  %v1373_v35 = vmax.f32 %v3241_v32, 0.0  ;;  %v3534_v32 = vld [vmem:[#allocation10 + $0x50] ss:$8 sps:$4 sm:$0xff]  }
 0x2b4   : > { %v3242_v34 = vpop.f32.mrb[10].mxu1  ;;  %v1371_v39 = vmax.f32 %v1140_v33, 0.0 }
 0x2b5   : > { %v1374_v36 = vmax.f32 %v3242_v34, 0.0  ;;  %v1143_v38 = vpop.f32.mrb[11].mxu1 }
 0x2b6   : > { %v1372_v40 = vmax.f32 %v1143_v38, 0.0  ;;  %v3539_v38 = vld [vmem:[#allocation10 + $0x64] ss:$8 sps:$4 sm:$0xff]  }
 0x2b7   : > { %v1432_v41 = vpack.c.bf16 %v1374_v36, %v1373_v35  ;;  %3312 = vmatmul.mubr.bf16.vlgmr.msra.gmra.mrb[64].mxu1 %v1428_v60 }
 0x2b8   : > { %v1431_v42 = vpack.c.bf16 %v1372_v40, %v1371_v39  ;;  %3315 = vmatprep.mubr.bf16.mxu1 %v1429_v22  ;;  %3383 = vmatpush1.bf16.msra.mxu1 %v4189_v37  ;;  %v3537_v39 = vld [vmem:[#allocation10 + $0x60] ss:$8 sps:$4 sm:$0xff]   ;;  %v3542_v40 = vld [vmem:[#allocation10 + $0x74] ss:$8 sps:$4 sm:$0xff]  }
 0x2b9   : > { %3376 = vmatprep.subr.bf16.mxu1 %v3524_v25 }
 0x2bc   : > { %3384 = vmatpush1.bf16.msra.mxu1 %v3522_v24  ;;  %v3531_v24 = vld [vmem:[#allocation10 + $0x40] ss:$8 sps:$4 sm:$0xff]  }
 0x2bd   : > { %3377 = vmatprep.subr.bf16.mxu1 %v3527_v54  ;;  %2013 = vmatpush1.bf16.msra.mxu0 %v3531_v24 }
 0x2be   : > { %2014 = vmatprep.subr.bf16.mxu0 %v3536_v28 }
 0x2bf   : > { %3316 = vmatmul.mubr.bf16.gmra.mrb[68].mxu1 %v1430_v21 }
 0x2c0   : > { %3319 = vmatprep.mubr.bf16.mxu1 %v1431_v42  ;;  %3385 = vmatpush1.bf16.msra.mxu1 %v3525_v53 }
 0x2c1   : > { %3378 = vmatprep.subr.bf16.mxu1 %v3530_v12  ;;  %2015 = vmatpush1.bf16.msra.mxu0 %v3534_v32 }
 0x2c2   : > { %v3245_v43 = vpop.f32.mrb[12].mxu1  ;;  %2016 = vmatprep.subr.bf16.mxu0 %v3539_v38 }
 0x2c3   : > { %v1156_v44 = vpop.f32.mrb[13].mxu1  ;;  %v1377_v46 = vmax.f32 %v3245_v43, 0.0 }
 0x2c4   : > { %v3246_v45 = vpop.f32.mrb[14].mxu1  ;;  %v1375_v49 = vmax.f32 %v1156_v44, 0.0  ;;  %3386 = vmatpush1.bf16.msra.mxu1 %v3528_v11 }
 0x2c5   : > { %v1378_v47 = vmax.f32 %v3246_v45, 0.0  ;;  %v1159_v48 = vpop.f32.mrb[15].mxu1  ;;  %3379 = vmatprep.subr.bf16.mxu1 %v3533_v23  ;;  %2017 = vmatpush1.bf16.msra.mxu0 %v3537_v39 }
 0x2c6   : > { %v1376_v50 = vmax.f32 %v1159_v48, 0.0  ;;  %2018 = vmatprep.subr.bf16.mxu0 %v3542_v40 }
 0x2c7   : > { %v1434_v51 = vpack.c.bf16 %v1378_v47, %v1377_v46  ;;  %3320 = vmatmul.mubr.bf16.gmra.mrb[72].mxu1 %v1432_v41  ;;  %v3540_v41 = vld [vmem:[#allocation10 + $0x70] ss:$8 sps:$4 sm:$0xff]  }
 0x2c8   : > { %v1433_v52 = vpack.c.bf16 %v1376_v50, %v1375_v49  ;;  %3387 = vmatpush1.bf16.msra.mxu1 %v3531_v24 }
 0x2c9   : > { %3380 = vmatprep.subr.bf16.mxu1 %v3536_v28  ;;  %2019 = vmatpush1.bf16.msra.mxu0 %v3540_v41 }
 0x2ca   : > { %3323 = vmatprep.mubr.bf16.mxu1 %v1433_v52 }
 0x2cc   : > { %3388 = vmatpush1.bf16.msra.mxu1 %v3534_v32 }
 0x2cd   : > { %3381 = vmatprep.subr.bf16.mxu1 %v3539_v38 }
 0x2cf   : > { %3324 = vmatmul.mubr.bf16.gmra.mrb[76].mxu1 %v1434_v51 }
 0x2d0   : > { %3389 = vmatpush1.bf16.msra.mxu1 %v3537_v39 }
 0x2d1   : > { %3382 = vmatprep.subr.bf16.mxu1 %v3542_v40 }
 0x2d2   : > { %v3249_v37 = vpop.f32.mrb[16].mxu1 }
 0x2d3   : > { %v1172_v55 = vpop.f32.mrb[17].mxu1  ;;  %v1381_v57 = vmax.f32 %v3249_v37, 0.0 }
 0x2d4   : > { %v3250_v56 = vpop.f32.mrb[18].mxu1  ;;  %v1379_v60 = vmax.f32 %v1172_v55, 0.0  ;;  %3390 = vmatpush1.bf16.msra.mxu1 %v3540_v41 }
 0x2d5   : > { %v1382_v58 = vmax.f32 %v3250_v56, 0.0  ;;  %v1175_v59 = vpop.f32.mrb[19].mxu1 }
 0x2d6   : > { %v1380_v61 = vmax.f32 %v1175_v59, 0.0 }
 0x2d7   : > { %v1436_v62 = vpack.c.bf16 %v1382_v58, %v1381_v57 }
 0x2d8   : > { %v1435_v63 = vpack.c.bf16 %v1380_v61, %v1379_v60 }
 0x2da   : > { %3327 = vmatprep.mubr.bf16.mxu1 %v1435_v63 }
 0x2db   : > { %3328 = vmatmul.mubr.bf16.gmra.mrb[80].mxu1 %v1436_v62 }
 0x2e2   : > { %v3253_v1 = vpop.f32.mrb[20].mxu1 }
 0x2e3   : > { %v1188_v2 = vpop.f32.mrb[21].mxu1  ;;  %v1385_v4 = vmax.f32 %v3253_v1, 0.0 }
 0x2e4   : > { %v3254_v3 = vpop.f32.mrb[22].mxu1  ;;  %v1383_v7 = vmax.f32 %v1188_v2, 0.0 }
 0x2e5   : > { %v1386_v5 = vmax.f32 %v3254_v3, 0.0  ;;  %v1191_v6 = vpop.f32.mrb[23].mxu1 }
 0x2e6   : > { %v1384_v8 = vmax.f32 %v1191_v6, 0.0 }
 0x2e7   : > { %v1438_v9 = vpack.c.bf16 %v1386_v5, %v1385_v4 }
 0x2e8   : > { %v1437_v10 = vpack.c.bf16 %v1384_v8, %v1383_v7 }
 0x2ea   : > { %3331 = vmatprep.mubr.bf16.mxu1 %v1437_v10 }
 0x2eb   : > { %3332 = vmatmul.mubr.bf16.gmra.mrb[84].mxu1 %v1438_v9 }
 0x2f2   : > { %v3257_v13 = vpop.f32.mrb[24].mxu1 }
 0x2f3   : > { %v1204_v14 = vpop.f32.mrb[25].mxu1  ;;  %v1389_v16 = vmax.f32 %v3257_v13, 0.0 }
 0x2f4   : > { %v3258_v15 = vpop.f32.mrb[26].mxu1  ;;  %v1387_v19 = vmax.f32 %v1204_v14, 0.0 }
 0x2f5   : > { %v1390_v17 = vmax.f32 %v3258_v15, 0.0  ;;  %v1207_v18 = vpop.f32.mrb[27].mxu1 }
 0x2f6   : > { %v1388_v20 = vmax.f32 %v1207_v18, 0.0 }
 0x2f7   : > { %v1440_v21 = vpack.c.bf16 %v1390_v17, %v1389_v16 }
 0x2f8   : > { %v1439_v22 = vpack.c.bf16 %v1388_v20, %v1387_v19 }
 0x2fa   : > { %3335 = vmatprep.mubr.bf16.mxu1 %v1439_v22 }
 0x2fb   : > { %3336 = vmatmul.mubr.bf16.gmra.mrb[88].mxu1 %v1440_v21 }
 0x302   : > { %v3261_v25 = vpop.f32.mrb[28].mxu1 }
 0x303   : > { %v1220_v26 = vpop.f32.mrb[29].mxu1  ;;  %v1393_v29 = vmax.f32 %v3261_v25, 0.0 }
 0x304   : > { %v3262_v27 = vpop.f32.mrb[30].mxu1  ;;  %v1391_v33 = vmax.f32 %v1220_v26, 0.0 }
 0x305   : > { %v1394_v30 = vmax.f32 %v3262_v27, 0.0  ;;  %v1223_v31 = vpop.f32.mrb[31].mxu1 }
 0x306   : > { %v1392_v34 = vmax.f32 %v1223_v31, 0.0 }
 0x307   : > { %v1442_v35 = vpack.c.bf16 %v1394_v30, %v1393_v29 }
 0x308   : > { %v1441_v36 = vpack.c.bf16 %v1392_v34, %v1391_v33 }
 0x30a   : > { %3339 = vmatprep.mubr.bf16.mxu1 %v1441_v36 }
 0x30b   : > { %3340 = vmatmul.mubr.bf16.gmra.mrb[92].mxu1 %v1442_v35 }
 0x312   : > { %v3265_v42 = vpop.f32.mrb[32].mxu1 }
 0x313   : > { %v1236_v43 = vpop.f32.mrb[33].mxu1  ;;  %v1397_v45 = vmax.f32 %v3265_v42, 0.0 }
 0x314   : > { %v3266_v44 = vpop.f32.mrb[34].mxu1  ;;  %v1395_v48 = vmax.f32 %v1236_v43, 0.0 }
 0x315   : > { %v1398_v46 = vmax.f32 %v3266_v44, 0.0  ;;  %v1239_v47 = vpop.f32.mrb[35].mxu1 }
 0x316   : > { %v1396_v49 = vmax.f32 %v1239_v47, 0.0 }
 0x317   : > { %v1444_v50 = vpack.c.bf16 %v1398_v46, %v1397_v45 }
 0x318   : > { %v1443_v51 = vpack.c.bf16 %v1396_v49, %v1395_v48 }
 0x31a   : > { %3343 = vmatprep.mubr.bf16.mxu1 %v1443_v51 }
 0x31b   : > { %3344 = vmatmul.mubr.bf16.gmra.mrb[96].mxu1 %v1444_v50 }
 0x322   : > { %v3269_v52 = vpop.f32.mrb[36].mxu1 }
 0x323   : > { %v1252_v53 = vpop.f32.mrb[37].mxu1  ;;  %v1401_v37 = vmax.f32 %v3269_v52, 0.0 }
 0x324   : > { %v3270_v54 = vpop.f32.mrb[38].mxu1  ;;  %v1399_v57 = vmax.f32 %v1252_v53, 0.0 }
 0x325   : > { %v1402_v55 = vmax.f32 %v3270_v54, 0.0  ;;  %v1255_v56 = vpop.f32.mrb[39].mxu1 }
 0x326   : > { %v1400_v58 = vmax.f32 %v1255_v56, 0.0 }
 0x327   : > { %v1446_v59 = vpack.c.bf16 %v1402_v55, %v1401_v37 }
 0x328   : > { %v1445_v60 = vpack.c.bf16 %v1400_v58, %v1399_v57 }
 0x32a   : > { %3347 = vmatprep.mubr.bf16.mxu1 %v1445_v60 }
 0x32b   : > { %3348 = vmatmul.mubr.bf16.gmra.mrb[100].mxu1 %v1446_v59 }
 0x332   : > { %v3273_v61 = vpop.f32.mrb[40].mxu1 }
 0x333   : > { %v1268_v62 = vpop.f32.mrb[41].mxu1  ;;  %v1405_v1 = vmax.f32 %v3273_v61, 0.0 }
 0x334   : > { %v3274_v63 = vpop.f32.mrb[42].mxu1  ;;  %v1403_v4 = vmax.f32 %v1268_v62, 0.0 }
 0x335   : > { %v1406_v2 = vmax.f32 %v3274_v63, 0.0  ;;  %v1271_v3 = vpop.f32.mrb[43].mxu1 }
 0x336   : > { %v1404_v5 = vmax.f32 %v1271_v3, 0.0 }
 0x337   : > { %v1448_v6 = vpack.c.bf16 %v1406_v2, %v1405_v1 }
 0x338   : > { %v1447_v7 = vpack.c.bf16 %v1404_v5, %v1403_v4 }
 0x33a   : > { %3351 = vmatprep.mubr.bf16.mxu1 %v1447_v7 }
 0x33b   : > { %3352 = vmatmul.mubr.bf16.gmra.mrb[104].mxu1 %v1448_v6 }
 0x342   : > { %v3277_v8 = vpop.f32.mrb[44].mxu1 }
 0x343   : > { %v1284_v9 = vpop.f32.mrb[45].mxu1  ;;  %v1409_v11 = vmax.f32 %v3277_v8, 0.0 }
 0x344   : > { %v3278_v10 = vpop.f32.mrb[46].mxu1  ;;  %v1407_v14 = vmax.f32 %v1284_v9, 0.0 }
 0x345   : > { %v1410_v12 = vmax.f32 %v3278_v10, 0.0  ;;  %v1287_v13 = vpop.f32.mrb[47].mxu1 }
 0x346   : > { %v1408_v15 = vmax.f32 %v1287_v13, 0.0 }
 0x347   : > { %v1450_v16 = vpack.c.bf16 %v1410_v12, %v1409_v11 }
 0x348   : > { %v1449_v17 = vpack.c.bf16 %v1408_v15, %v1407_v14 }
 0x34a   : > { %3355 = vmatprep.mubr.bf16.mxu1 %v1449_v17 }
 0x34b   : > { %3356 = vmatmul.mubr.bf16.gmra.mrb[108].mxu1 %v1450_v16 }
 0x352   : > { %v3281_v18 = vpop.f32.mrb[48].mxu1 }
 0x353   : > { %v1300_v19 = vpop.f32.mrb[49].mxu1  ;;  %v1413_v21 = vmax.f32 %v3281_v18, 0.0 }
 0x354   : > { %v3282_v20 = vpop.f32.mrb[50].mxu1  ;;  %v1411_v24 = vmax.f32 %v1300_v19, 0.0 }
 0x355   : > { %v1414_v22 = vmax.f32 %v3282_v20, 0.0  ;;  %v1303_v23 = vpop.f32.mrb[51].mxu1 }
 0x356   : > { %v1412_v25 = vmax.f32 %v1303_v23, 0.0 }
 0x357   : > { %v1452_v26 = vpack.c.bf16 %v1414_v22, %v1413_v21 }
 0x358   : > { %v1451_v27 = vpack.c.bf16 %v1412_v25, %v1411_v24 }
 0x35a   : > { %3359 = vmatprep.mubr.bf16.mxu1 %v1451_v27 }
 0x35b   : > { %3360 = vmatmul.mubr.bf16.gmra.mrb[112].mxu1 %v1452_v26 }
 0x362   : > { %v3285_v28 = vpop.f32.mrb[52].mxu1 }
 0x363   : > { %v1316_v29 = vpop.f32.mrb[53].mxu1  ;;  %v1417_v31 = vmax.f32 %v3285_v28, 0.0 }
 0x364   : > { %v3286_v30 = vpop.f32.mrb[54].mxu1  ;;  %v1415_v34 = vmax.f32 %v1316_v29, 0.0 }
 0x365   : > { %v1418_v32 = vmax.f32 %v3286_v30, 0.0  ;;  %v1319_v33 = vpop.f32.mrb[55].mxu1 }
 0x366   : > { %v1416_v35 = vmax.f32 %v1319_v33, 0.0 }
 0x367   : > { %v1454_v36 = vpack.c.bf16 %v1418_v32, %v1417_v31 }
 0x368   : > { %v1453_v38 = vpack.c.bf16 %v1416_v35, %v1415_v34 }
 0x36a   : > { %3363 = vmatprep.mubr.bf16.mxu1 %v1453_v38 }
 0x36b   : > { %3364 = vmatmul.mubr.bf16.gmra.mrb[116].mxu1 %v1454_v36 }
 0x372   : > { %v3289_v39 = vpop.f32.mrb[56].mxu1 }
 0x373   : > { %v1332_v40 = vpop.f32.mrb[57].mxu1  ;;  %v1421_v42 = vmax.f32 %v3289_v39, 0.0 }
 0x374   : > { %v3290_v41 = vpop.f32.mrb[58].mxu1  ;;  %v1419_v45 = vmax.f32 %v1332_v40, 0.0 }
 0x375   : > { %v1422_v43 = vmax.f32 %v3290_v41, 0.0  ;;  %v1335_v44 = vpop.f32.mrb[59].mxu1 }
 0x376   : > { %v1420_v46 = vmax.f32 %v1335_v44, 0.0 }
 0x377   : > { %v1456_v47 = vpack.c.bf16 %v1422_v43, %v1421_v42 }
 0x378   : > { %v1455_v48 = vpack.c.bf16 %v1420_v46, %v1419_v45 }
 0x37a   : > { %3367 = vmatprep.mubr.bf16.mxu1 %v1455_v48 }
 0x37b   : > { %3368 = vmatmul.mubr.bf16.gmra.mrb[120].mxu1 %v1456_v47 }
 0x382   : > { %v3293_v49 = vpop.f32.mrb[60].mxu1 }
 0x383   : > { %v1348_v50 = vpop.f32.mrb[61].mxu1  ;;  %v1425_v52 = vmax.f32 %v3293_v49, 0.0 }
 0x384   : > { %v3294_v51 = vpop.f32.mrb[62].mxu1  ;;  %v1423_v37 = vmax.f32 %v1348_v50, 0.0 }
 0x385   : > { %v1426_v53 = vmax.f32 %v3294_v51, 0.0  ;;  %v1351_v54 = vpop.f32.mrb[63].mxu1 }
 0x386   : > { %v1424_v55 = vmax.f32 %v1351_v54, 0.0 }
 0x387   : > { %v1458_v56 = vpack.c.bf16 %v1426_v53, %v1425_v52 }
 0x388   : > { %v1457_v57 = vpack.c.bf16 %v1424_v55, %v1423_v37 }
 0x38a   : > { %v3313_v58 = vpop.f32.mrb[64].mxu1  ;;  %3371 = vmatprep.mubr.bf16.mxu1 %v1457_v57 }
 0x38b   : > { %v1557_v59 = vpop.f32.mrb[65].mxu1  ;;  %3372 = vmatmul.mubr.bf16.gmra.mrb[124].mxu1 %v1458_v56  ;;  %v1814_v61 = vmax.f32 %v3313_v58, 0.0 }
 0x38c   : > { %v3314_v60 = vpop.f32.mrb[66].mxu1  ;;  %2176 = vmatprep.mubr.bf16.mxu1 %v3772_v0  ;;  %v1812_v1 = vmax.f32 %v1557_v59, 0.0 }
 0x38d   : > { %v1815_v62 = vmax.f32 %v3314_v60, 0.0  ;;  %v1560_v63 = vpop.f32.mrb[67].mxu1 }
 0x38e   : > { %v1813_v2 = vmax.f32 %v1560_v63, 0.0 }
 0x38f   : > { %v1877_v3 = vpack.c.bf16 %v1815_v62, %v1814_v61 }
 0x390   : > { %v1876_v4 = vpack.c.bf16 %v1813_v2, %v1812_v1 }
 0x392   : > { %v3317_v5 = vpop.f32.mrb[68].mxu1  ;;  %2037 = vmatmul.mubr.bf16.vlgmr.msra.gmra.mrb[128].mxu0 %v1876_v4 }
 0x393   : > { %v1573_v6 = vpop.f32.mrb[69].mxu1  ;;  %2046 = vmatprep.mubr.bf16.mxu0 %v3772_v0  ;;  %v1818_v8 = vmax.f32 %v3317_v5, 0.0 }
 0x394   : > { %v3318_v7 = vpop.f32.mrb[70].mxu1  ;;  %v1816_v11 = vmax.f32 %v1573_v6, 0.0 }
 0x395   : > { %v1819_v9 = vmax.f32 %v3318_v7, 0.0  ;;  %v1576_v10 = vpop.f32.mrb[71].mxu1 }
 0x396   : > { %v1817_v12 = vmax.f32 %v1576_v10, 0.0 }
 0x397   : > { %v1879_v13 = vpack.c.bf16 %v1819_v9, %v1818_v8 }
 0x398   : > { %v1878_v14 = vpack.c.bf16 %v1817_v12, %v1816_v11 }
 0x39a   : > { %v3321_v15 = vpop.f32.mrb[72].mxu1  ;;  %2047 = vmatmul.mubr.bf16.gmra.mrb[132].mxu0 %v1877_v3 }
 0x39b   : > { %v1589_v16 = vpop.f32.mrb[73].mxu1  ;;  %2056 = vmatprep.mubr.bf16.mxu0 %v3772_v0  ;;  %v1822_v18 = vmax.f32 %v3321_v15, 0.0 }
 0x39c   : > { %v3322_v17 = vpop.f32.mrb[74].mxu1  ;;  %v1820_v21 = vmax.f32 %v1589_v16, 0.0 }
 0x39d   : > { %v1823_v19 = vmax.f32 %v3322_v17, 0.0  ;;  %v1592_v20 = vpop.f32.mrb[75].mxu1 }
 0x39e   : > { %v1821_v22 = vmax.f32 %v1592_v20, 0.0 }
 0x39f   : > { %v1881_v23 = vpack.c.bf16 %v1823_v19, %v1822_v18 }
 0x3a0   : > { %v1880_v24 = vpack.c.bf16 %v1821_v22, %v1820_v21 }
 0x3a2   : > { %v3325_v25 = vpop.f32.mrb[76].mxu1  ;;  %2057 = vmatmul.mubr.bf16.gmra.mrb[136].mxu0 %v1878_v14 }
 0x3a3   : > { %v1605_v26 = vpop.f32.mrb[77].mxu1  ;;  %2066 = vmatprep.mubr.bf16.mxu0 %v3772_v0  ;;  %v1826_v28 = vmax.f32 %v3325_v25, 0.0 }
 0x3a4   : > { %v3326_v27 = vpop.f32.mrb[78].mxu1  ;;  %v1824_v31 = vmax.f32 %v1605_v26, 0.0 }
 0x3a5   : > { %v1827_v29 = vmax.f32 %v3326_v27, 0.0  ;;  %v1608_v30 = vpop.f32.mrb[79].mxu1 }
 0x3a6   : > { %v1825_v32 = vmax.f32 %v1608_v30, 0.0 }
 0x3a7   : > { %v1883_v33 = vpack.c.bf16 %v1827_v29, %v1826_v28 }
 0x3a8   : > { %v1882_v34 = vpack.c.bf16 %v1825_v32, %v1824_v31 }
 0x3aa   : > { %2067 = vmatmul.mubr.bf16.gmra.mrb[140].mxu0 %v1879_v13 }
 0x3ab   : > { %2076 = vmatprep.mubr.bf16.mxu0 %v3772_v0 }
 0x3ae   : > { %v3329_v35 = vpop.f32.mrb[80].mxu1 }
 0x3af   : > { %v1621_v36 = vpop.f32.mrb[81].mxu1  ;;  %v1830_v39 = vmax.f32 %v3329_v35, 0.0 }
 0x3b0   : > { %v3330_v38 = vpop.f32.mrb[82].mxu1  ;;  %v1828_v42 = vmax.f32 %v1621_v36, 0.0 }
 0x3b1   : > { %v1831_v40 = vmax.f32 %v3330_v38, 0.0  ;;  %v1624_v41 = vpop.f32.mrb[83].mxu1 }
 0x3b2   : > { %v1829_v43 = vmax.f32 %v1624_v41, 0.0  ;;  %2077 = vmatmul.mubr.bf16.gmra.mrb[144].mxu0 %v1880_v24 }
 0x3b3   : > { %v1885_v44 = vpack.c.bf16 %v1831_v40, %v1830_v39  ;;  %2086 = vmatprep.mubr.bf16.mxu0 %v3772_v0 }
 0x3b4   : > { %v1884_v45 = vpack.c.bf16 %v1829_v43, %v1828_v42 }
 0x3ba   : > { %2087 = vmatmul.mubr.bf16.gmra.mrb[148].mxu0 %v1881_v23 }
 0x3bb   : > { %2096 = vmatprep.mubr.bf16.mxu0 %v3772_v0 }
 0x3be   : > { %v3333_v46 = vpop.f32.mrb[84].mxu1 }
 0x3bf   : > { %v1637_v47 = vpop.f32.mrb[85].mxu1  ;;  %v1834_v49 = vmax.f32 %v3333_v46, 0.0 }
 0x3c0   : > { %v3334_v48 = vpop.f32.mrb[86].mxu1  ;;  %v1832_v52 = vmax.f32 %v1637_v47, 0.0 }
 0x3c1   : > { %v1835_v50 = vmax.f32 %v3334_v48, 0.0  ;;  %v1640_v51 = vpop.f32.mrb[87].mxu1 }
 0x3c2   : > { %v1833_v53 = vmax.f32 %v1640_v51, 0.0  ;;  %2097 = vmatmul.mubr.bf16.gmra.mrb[152].mxu0 %v1882_v34 }
 0x3c3   : > { %v1887_v54 = vpack.c.bf16 %v1835_v50, %v1834_v49  ;;  %2106 = vmatprep.mubr.bf16.mxu0 %v3772_v0 }
 0x3c4   : > { %v1886_v37 = vpack.c.bf16 %v1833_v53, %v1832_v52 }
 0x3ca   : > { %2107 = vmatmul.mubr.bf16.gmra.mrb[156].mxu0 %v1883_v33 }
 0x3cb   : > { %2116 = vmatprep.mubr.bf16.mxu0 %v3772_v0 }
 0x3ce   : > { %v3337_v55 = vpop.f32.mrb[88].mxu1 }
 0x3cf   : > { %v1653_v56 = vpop.f32.mrb[89].mxu1  ;;  %v1838_v58 = vmax.f32 %v3337_v55, 0.0 }
 0x3d0   : > { %v3338_v57 = vpop.f32.mrb[90].mxu1  ;;  %v1836_v61 = vmax.f32 %v1653_v56, 0.0 }
 0x3d1   : > { %v1839_v59 = vmax.f32 %v3338_v57, 0.0  ;;  %v1656_v60 = vpop.f32.mrb[91].mxu1 }
 0x3d2   : > { %v1837_v62 = vmax.f32 %v1656_v60, 0.0  ;;  %2117 = vmatmul.mubr.bf16.gmra.mrb[160].mxu0 %v1884_v45 }
 0x3d3   : > { %v1889_v63 = vpack.c.bf16 %v1839_v59, %v1838_v58  ;;  %2126 = vmatprep.mubr.bf16.mxu0 %v3772_v0 }
 0x3d4   : > { %v1888_v1 = vpack.c.bf16 %v1837_v62, %v1836_v61 }
 0x3da   : > { %2127 = vmatmul.mubr.bf16.gmra.mrb[164].mxu0 %v1885_v44 }
 0x3db   : > { %2136 = vmatprep.mubr.bf16.mxu0 %v3772_v0 }
 0x3de   : > { %v3341_v2 = vpop.f32.mrb[92].mxu1 }
 0x3df   : > { %v1669_v3 = vpop.f32.mrb[93].mxu1  ;;  %v1842_v5 = vmax.f32 %v3341_v2, 0.0 }
 0x3e0   : > { %v3342_v4 = vpop.f32.mrb[94].mxu1  ;;  %v1840_v8 = vmax.f32 %v1669_v3, 0.0 }
 0x3e1   : > { %v1843_v6 = vmax.f32 %v3342_v4, 0.0  ;;  %v1672_v7 = vpop.f32.mrb[95].mxu1 }
 0x3e2   : > { %v1841_v9 = vmax.f32 %v1672_v7, 0.0  ;;  %2137 = vmatmul.mubr.bf16.gmra.mrb[168].mxu0 %v1886_v37 }
 0x3e3   : > { %v1891_v10 = vpack.c.bf16 %v1843_v6, %v1842_v5  ;;  %2146 = vmatprep.mubr.bf16.mxu0 %v3772_v0 }
 0x3e4   : > { %v1890_v11 = vpack.c.bf16 %v1841_v9, %v1840_v8 }
 0x3e6   : > { %2177 = vmatmul.mubr.bf16.vlgmr.msra.gmra.mrb[128].mxu1 %v1890_v11 }
 0x3e7   : > { %2186 = vmatprep.mubr.bf16.mxu1 %v3772_v0 }
 0x3ea   : > { %2147 = vmatmul.mubr.bf16.gmra.mrb[172].mxu0 %v1887_v54 }
 0x3eb   : > { %2156 = vmatprep.mubr.bf16.mxu0 %v3772_v0 }
 0x3ee   : > { %v3345_v12 = vpop.f32.mrb[96].mxu1  ;;  %2187 = vmatmul.mubr.bf16.gmra.mrb[132].mxu1 %v1891_v10 }
 0x3ef   : > { %v1685_v13 = vpop.f32.mrb[97].mxu1  ;;  %2196 = vmatprep.mubr.bf16.mxu1 %v3772_v0  ;;  %v1846_v15 = vmax.f32 %v3345_v12, 0.0 }
 0x3f0   : > { %v3346_v14 = vpop.f32.mrb[98].mxu1  ;;  %v1844_v18 = vmax.f32 %v1685_v13, 0.0 }
 0x3f1   : > { %v1847_v16 = vmax.f32 %v3346_v14, 0.0  ;;  %v1688_v17 = vpop.f32.mrb[99].mxu1 }
 0x3f2   : > { %v1845_v19 = vmax.f32 %v1688_v17, 0.0  ;;  %2157 = vmatmul.mubr.bf16.gmra.mrb[176].mxu0 %v1888_v1 }
 0x3f3   : > { %v1893_v20 = vpack.c.bf16 %v1847_v16, %v1846_v15  ;;  %2166 = vmatprep.mubr.bf16.mxu0 %v3772_v0 }
 0x3f4   : > { %v1892_v21 = vpack.c.bf16 %v1845_v19, %v1844_v18 }
 0x3f6   : > { %2197 = vmatmul.mubr.bf16.gmra.mrb[136].mxu1 %v1892_v21 }
 0x3f7   : > { %2206 = vmatprep.mubr.bf16.mxu1 %v3772_v0 }
 0x3fa   : > { %2167 = vmatmul.mubr.bf16.gmra.mrb[180].mxu0 %v1889_v63 }
 0x3fe   : > { %v3349_v22 = vpop.f32.mrb[100].mxu1  ;;  %2207 = vmatmul.mubr.bf16.gmra.mrb[140].mxu1 %v1893_v20 }
 0x3ff   : > { %v1701_v23 = vpop.f32.mrb[101].mxu1  ;;  %2216 = vmatprep.mubr.bf16.mxu1 %v3772_v0  ;;  %v1850_v25 = vmax.f32 %v3349_v22, 0.0 }
 0x400   : > { %v3350_v24 = vpop.f32.mrb[102].mxu1  ;;  %v1848_v28 = vmax.f32 %v1701_v23, 0.0 }
 0x401   : > { %v1851_v26 = vmax.f32 %v3350_v24, 0.0  ;;  %v1704_v27 = vpop.f32.mrb[103].mxu1 }
 0x402   : > { %v1849_v29 = vmax.f32 %v1704_v27, 0.0 }
 0x403   : > { %v1895_v30 = vpack.c.bf16 %v1851_v26, %v1850_v25 }
 0x404   : > { %v1894_v31 = vpack.c.bf16 %v1849_v29, %v1848_v28 }
 0x406   : > { %2217 = vmatmul.mubr.bf16.gmra.mrb[144].mxu1 %v1894_v31 }
 0x407   : > { %2226 = vmatprep.mubr.bf16.mxu1 %v3772_v0 }
 0x40e   : > { %v3353_v32 = vpop.f32.mrb[104].mxu1  ;;  %2227 = vmatmul.mubr.bf16.gmra.mrb[148].mxu1 %v1895_v30 }
 0x40f   : > { %v1717_v33 = vpop.f32.mrb[105].mxu1  ;;  %2236 = vmatprep.mubr.bf16.mxu1 %v3772_v0  ;;  %v1854_v35 = vmax.f32 %v3353_v32, 0.0 }
 0x410   : > { %v3354_v34 = vpop.f32.mrb[106].mxu1  ;;  %v1852_v39 = vmax.f32 %v1717_v33, 0.0 }
 0x411   : > { %v1855_v36 = vmax.f32 %v3354_v34, 0.0  ;;  %v1720_v38 = vpop.f32.mrb[107].mxu1 }
 0x412   : > { %v1853_v40 = vmax.f32 %v1720_v38, 0.0 }
 0x413   : > { %v1897_v41 = vpack.c.bf16 %v1855_v36, %v1854_v35 }
 0x414   : > { %v1896_v42 = vpack.c.bf16 %v1853_v40, %v1852_v39 }
 0x416   : > { %2237 = vmatmul.mubr.bf16.gmra.mrb[152].mxu1 %v1896_v42 }
 0x417   : > { %2246 = vmatprep.mubr.bf16.mxu1 %v3772_v0 }
 0x41e   : > { %v3357_v43 = vpop.f32.mrb[108].mxu1  ;;  %2247 = vmatmul.mubr.bf16.gmra.mrb[156].mxu1 %v1897_v41 }
 0x41f   : > { %v1733_v44 = vpop.f32.mrb[109].mxu1  ;;  %2256 = vmatprep.mubr.bf16.mxu1 %v3772_v0  ;;  %v1858_v46 = vmax.f32 %v3357_v43, 0.0 }
 0x420   : > { %v3358_v45 = vpop.f32.mrb[110].mxu1  ;;  %v1856_v49 = vmax.f32 %v1733_v44, 0.0 }
 0x421   : > { %v1859_v47 = vmax.f32 %v3358_v45, 0.0  ;;  %v1736_v48 = vpop.f32.mrb[111].mxu1 }
 0x422   : > { %v1857_v50 = vmax.f32 %v1736_v48, 0.0 }
 0x423   : > { %v1899_v51 = vpack.c.bf16 %v1859_v47, %v1858_v46 }
 0x424   : > { %v1898_v52 = vpack.c.bf16 %v1857_v50, %v1856_v49 }
 0x426   : > { %2257 = vmatmul.mubr.bf16.gmra.mrb[160].mxu1 %v1898_v52 }
 0x427   : > { %2266 = vmatprep.mubr.bf16.mxu1 %v3772_v0 }
 0x42e   : > { %v3361_v53 = vpop.f32.mrb[112].mxu1  ;;  %2267 = vmatmul.mubr.bf16.gmra.mrb[164].mxu1 %v1899_v51 }
 0x42f   : > { %v1749_v54 = vpop.f32.mrb[113].mxu1  ;;  %2276 = vmatprep.mubr.bf16.mxu1 %v3772_v0  ;;  %v1862_v55 = vmax.f32 %v3361_v53, 0.0 }
 0x430   : > { %v3362_v37 = vpop.f32.mrb[114].mxu1  ;;  %v1860_v58 = vmax.f32 %v1749_v54, 0.0 }
 0x431   : > { %v1863_v56 = vmax.f32 %v3362_v37, 0.0  ;;  %v1752_v57 = vpop.f32.mrb[115].mxu1 }
 0x432   : > { %v1861_v59 = vmax.f32 %v1752_v57, 0.0 }
 0x433   : > { %v1901_v60 = vpack.c.bf16 %v1863_v56, %v1862_v55 }
 0x434   : > { %v1900_v61 = vpack.c.bf16 %v1861_v59, %v1860_v58 }
 0x436   : > { %2277 = vmatmul.mubr.bf16.gmra.mrb[168].mxu1 %v1900_v61 }
 0x437   : > { %2286 = vmatprep.mubr.bf16.mxu1 %v3772_v0 }
 0x43e   : > { %v3365_v62 = vpop.f32.mrb[116].mxu1  ;;  %2287 = vmatmul.mubr.bf16.gmra.mrb[172].mxu1 %v1901_v60 }
 0x43f   : > { %v1765_v63 = vpop.f32.mrb[117].mxu1  ;;  %2296 = vmatprep.mubr.bf16.mxu1 %v3772_v0  ;;  %v1866_v2 = vmax.f32 %v3365_v62, 0.0 }
 0x440   : > { %v3366_v1 = vpop.f32.mrb[118].mxu1  ;;  %v1864_v5 = vmax.f32 %v1765_v63, 0.0 }
 0x441   : > { %v1867_v3 = vmax.f32 %v3366_v1, 0.0  ;;  %v1768_v4 = vpop.f32.mrb[119].mxu1 }
 0x442   : > { %v1865_v6 = vmax.f32 %v1768_v4, 0.0 }
 0x443   : > { %v1903_v7 = vpack.c.bf16 %v1867_v3, %v1866_v2 }
 0x444   : > { %v1902_v8 = vpack.c.bf16 %v1865_v6, %v1864_v5 }
 0x446   : > { %2297 = vmatmul.mubr.bf16.gmra.mrb[176].mxu1 %v1902_v8 }
 0x447   : > { %2306 = vmatprep.mubr.bf16.mxu1 %v3772_v0 }
 0x44e   : > { %v3369_v9 = vpop.f32.mrb[120].mxu1  ;;  %2307 = vmatmul.mubr.bf16.gmra.mrb[180].mxu1 %v1903_v7 }
 0x44f   : > { %v1781_v10 = vpop.f32.mrb[121].mxu1  ;;  %2316 = vmatprep.mubr.bf16.mxu1 %v3772_v0  ;;  %v1870_v12 = vmax.f32 %v3369_v9, 0.0 }
 0x450   : > { %v3370_v11 = vpop.f32.mrb[122].mxu1  ;;  %v1868_v15 = vmax.f32 %v1781_v10, 0.0 }
 0x451   : > { %v1871_v13 = vmax.f32 %v3370_v11, 0.0  ;;  %v1784_v14 = vpop.f32.mrb[123].mxu1 }
 0x452   : > { %v1869_v16 = vmax.f32 %v1784_v14, 0.0 }
 0x453   : > { %v1905_v17 = vpack.c.bf16 %v1871_v13, %v1870_v12 }
 0x454   : > { %v1904_v18 = vpack.c.bf16 %v1869_v16, %v1868_v15 }
 0x456   : > { %2317 = vmatmul.mubr.bf16.gmra.mrb[184].mxu1 %v1904_v18 }
 0x457   : > { %2326 = vmatprep.mubr.bf16.mxu1 %v3772_v0 }
 0x45e   : > { %v3373_v19 = vpop.f32.mrb[124].mxu1  ;;  %2327 = vmatmul.mubr.bf16.gmra.mrb[188].mxu1 %v1905_v17 }
 0x45f   : > { %v1797_v20 = vpop.f32.mrb[125].mxu1  ;;  %2336 = vmatprep.mubr.bf16.mxu1 %v3772_v0  ;;  %v1874_v22 = vmax.f32 %v3373_v19, 0.0 }
 0x460   : > { %v3374_v21 = vpop.f32.mrb[126].mxu1  ;;  %v1872_v25 = vmax.f32 %v1797_v20, 0.0 }
 0x461   : > { %v1875_v23 = vmax.f32 %v3374_v21, 0.0  ;;  %v1800_v24 = vpop.f32.mrb[127].mxu1 }
 0x462   : > { %v1873_v26 = vmax.f32 %v1800_v24, 0.0 }
 0x463   : > { %v1907_v27 = vpack.c.bf16 %v1875_v23, %v1874_v22 }
 0x464   : > { %v1906_v28 = vpack.c.bf16 %v1873_v26, %v1872_v25 }
 0x465   : > { %v2038_v29 = vpop.f32.mrb[128].mxu0 }
 0x466   : > { %v2040_v30 = vpop.f32.mrb[129].mxu0  ;;  %2337 = vmatmul.mubr.bf16.gmra.mrb[192].mxu1 %v1906_v28 }
 0x467   : > { %v3069_v31 = vpack.c.bf16 %v2040_v30, %v2038_v29  ;;  %v2042_v32 = vpop.f32.mrb[130].mxu0  ;;  %2346 = vmatprep.mubr.bf16.mxu1 %v3772_v0 }
 0x468   : > { %v2044_v33 = vpop.f32.mrb[131].mxu0 }
 0x469   : > { %2741 = vst [vmem:[%s4225_s26] sm:$0xff] %v3069_v31  ;;  %v3070_v34 = vpack.c.bf16 %v2044_v33, %v2042_v32 }
 0x46b   : > { %2742 = vst [vmem:[%s4225_s26 + $0x8] sm:$0xff] %v3070_v34 }
 0x46d   : > { %v2048_v35 = vpop.f32.mrb[132].mxu0 }
 0x46e   : > { %v2050_v36 = vpop.f32.mrb[133].mxu0  ;;  %2347 = vmatmul.mubr.bf16.gmra.mrb[196].mxu1 %v1907_v27 }
 0x46f   : > { %v3071_v38 = vpack.c.bf16 %v2050_v36, %v2048_v35  ;;  %v2052_v39 = vpop.f32.mrb[134].mxu0 }
 0x470   : > { %v2054_v40 = vpop.f32.mrb[135].mxu0 }
 0x471   : > { %2743 = vst [vmem:[%s4225_s26 + $0x10] sm:$0xff] %v3071_v38  ;;  %v3072_v0 = vpack.c.bf16 %v2054_v40, %v2052_v39 }
 0x473   : > { %2744 = vst [vmem:[%s4225_s26 + $0x18] sm:$0xff] %v3072_v0 }
 0x475   : > { %v2058_v41 = vpop.f32.mrb[136].mxu0 }
 0x476   : > { %v2060_v42 = vpop.f32.mrb[137].mxu0 }
 0x477   : > { %v3073_v43 = vpack.c.bf16 %v2060_v42, %v2058_v41  ;;  %v2062_v44 = vpop.f32.mrb[138].mxu0 }
 0x478   : > { %v2064_v45 = vpop.f32.mrb[139].mxu0 }
 0x479   : > { %2745 = vst [vmem:[%s4225_s26 + $0x20] sm:$0xff] %v3073_v43  ;;  %v3074_v46 = vpack.c.bf16 %v2064_v45, %v2062_v44 }
 0x47b   : > { %2746 = vst [vmem:[%s4225_s26 + $0x28] sm:$0xff] %v3074_v46 }
 0x47d   : > { %v2068_v47 = vpop.f32.mrb[140].mxu0 }
 0x47e   : > { %v2070_v48 = vpop.f32.mrb[141].mxu0 }
 0x47f   : > { %v3075_v49 = vpack.c.bf16 %v2070_v48, %v2068_v47  ;;  %v2072_v50 = vpop.f32.mrb[142].mxu0 }
 0x480   : > { %v2074_v51 = vpop.f32.mrb[143].mxu0 }
 0x481   : > { %2747 = vst [vmem:[%s4225_s26 + $0x30] sm:$0xff] %v3075_v49  ;;  %v3076_v52 = vpack.c.bf16 %v2074_v51, %v2072_v50 }
 0x483   : > { %2748 = vst [vmem:[%s4225_s26 + $0x38] sm:$0xff] %v3076_v52 }
 0x485   : > { %v2078_v53 = vpop.f32.mrb[144].mxu0 }
 0x486   : > { %v2080_v54 = vpop.f32.mrb[145].mxu0 }
 0x487   : > { %v3077_v37 = vpack.c.bf16 %v2080_v54, %v2078_v53  ;;  %v2082_v55 = vpop.f32.mrb[146].mxu0 }
 0x488   : > { %v2084_v56 = vpop.f32.mrb[147].mxu0 }
 0x489   : > { %2749 = vst [vmem:[%s4225_s26 + $0x40] sm:$0xff] %v3077_v37  ;;  %v3078_v57 = vpack.c.bf16 %v2084_v56, %v2082_v55 }
 0x48b   : > { %2750 = vst [vmem:[%s4225_s26 + $0x48] sm:$0xff] %v3078_v57 }
 0x48d   : > { %v2088_v58 = vpop.f32.mrb[148].mxu0 }
 0x48e   : > { %v2090_v59 = vpop.f32.mrb[149].mxu0 }
 0x48f   : > { %v3079_v60 = vpack.c.bf16 %v2090_v59, %v2088_v58  ;;  %v2092_v61 = vpop.f32.mrb[150].mxu0 }
 0x490   : > { %v2094_v62 = vpop.f32.mrb[151].mxu0 }
 0x491   : > { %2751 = vst [vmem:[%s4225_s26 + $0x50] sm:$0xff] %v3079_v60  ;;  %v3080_v63 = vpack.c.bf16 %v2094_v62, %v2092_v61 }
 0x493   : > { %2752 = vst [vmem:[%s4225_s26 + $0x58] sm:$0xff] %v3080_v63 }
 0x495   : > { %v2098_v1 = vpop.f32.mrb[152].mxu0 }
 0x496   : > { %v2100_v2 = vpop.f32.mrb[153].mxu0 }
 0x497   : > { %v3081_v3 = vpack.c.bf16 %v2100_v2, %v2098_v1  ;;  %v2102_v4 = vpop.f32.mrb[154].mxu0 }
 0x498   : > { %v2104_v5 = vpop.f32.mrb[155].mxu0 }
 0x499   : > { %2753 = vst [vmem:[%s4225_s26 + $0x60] sm:$0xff] %v3081_v3  ;;  %v3082_v6 = vpack.c.bf16 %v2104_v5, %v2102_v4 }
 0x49b   : > { %2754 = vst [vmem:[%s4225_s26 + $0x68] sm:$0xff] %v3082_v6 }
 0x49d   : > { %v2108_v7 = vpop.f32.mrb[156].mxu0 }
 0x49e   : > { %v2110_v8 = vpop.f32.mrb[157].mxu0 }
 0x49f   : > { %v3083_v9 = vpack.c.bf16 %v2110_v8, %v2108_v7  ;;  %v2112_v10 = vpop.f32.mrb[158].mxu0 }
 0x4a0   : > { %v2114_v11 = vpop.f32.mrb[159].mxu0 }
 0x4a1   : > { %2755 = vst [vmem:[%s4225_s26 + $0x70] sm:$0xff] %v3083_v9  ;;  %v3084_v12 = vpack.c.bf16 %v2114_v11, %v2112_v10 }
 0x4a3   : > { %2756 = vst [vmem:[%s4225_s26 + $0x78] sm:$0xff] %v3084_v12 }
 0x4a5   : > { %v2118_v13 = vpop.f32.mrb[160].mxu0 }
 0x4a6   : > { %v2120_v14 = vpop.f32.mrb[161].mxu0 }
 0x4a7   : > { %v3085_v15 = vpack.c.bf16 %v2120_v14, %v2118_v13  ;;  %v2122_v16 = vpop.f32.mrb[162].mxu0 }
 0x4a8   : > { %v2124_v17 = vpop.f32.mrb[163].mxu0 }
 0x4a9   : > { %2757 = vst [vmem:[%s4225_s26 + $0x80] sm:$0xff] %v3085_v15  ;;  %v3086_v18 = vpack.c.bf16 %v2124_v17, %v2122_v16 }
 0x4ab   : > { %2758 = vst [vmem:[%s4225_s26 + $0x88] sm:$0xff] %v3086_v18 }
 0x4ad   : > { %v2128_v19 = vpop.f32.mrb[164].mxu0 }
 0x4ae   : > { %v2130_v20 = vpop.f32.mrb[165].mxu0 }
 0x4af   : > { %v3087_v21 = vpack.c.bf16 %v2130_v20, %v2128_v19  ;;  %v2132_v22 = vpop.f32.mrb[166].mxu0 }
 0x4b0   : > { %v2134_v23 = vpop.f32.mrb[167].mxu0 }
 0x4b1   : > { %2759 = vst [vmem:[%s4225_s26 + $0x90] sm:$0xff] %v3087_v21  ;;  %v3088_v24 = vpack.c.bf16 %v2134_v23, %v2132_v22 }
 0x4b3   : > { %2760 = vst [vmem:[%s4225_s26 + $0x98] sm:$0xff] %v3088_v24 }
 0x4b5   : > { %v2138_v25 = vpop.f32.mrb[168].mxu0 }
 0x4b6   : > { %v2140_v26 = vpop.f32.mrb[169].mxu0 }
 0x4b7   : > { %v3089_v27 = vpack.c.bf16 %v2140_v26, %v2138_v25  ;;  %v2142_v28 = vpop.f32.mrb[170].mxu0 }
 0x4b8   : > { %v2144_v29 = vpop.f32.mrb[171].mxu0 }
 0x4b9   : > { %2761 = vst [vmem:[%s4225_s26 + $0xa0] sm:$0xff] %v3089_v27  ;;  %v3090_v30 = vpack.c.bf16 %v2144_v29, %v2142_v28  ;;  %v2178_v31 = vpop.f32.mrb[128].mxu1 }
 0x4ba   : > { %v2180_v32 = vpop.f32.mrb[129].mxu1 }
 0x4bb   : > { %2762 = vst [vmem:[%s4225_s26 + $0xa8] sm:$0xff] %v3090_v30  ;;  %v3097_v33 = vpack.c.bf16 %v2180_v32, %v2178_v31  ;;  %v2182_v34 = vpop.f32.mrb[130].mxu1 }
 0x4bc   : > { %v2184_v35 = vpop.f32.mrb[131].mxu1 }
 0x4bd   : > { %2769 = vst [vmem:[%s4225_s26 + $0xe0] sm:$0xff] %v3097_v33  ;;  %v3098_v36 = vpack.c.bf16 %v2184_v35, %v2182_v34  ;;  %v2148_v38 = vpop.f32.mrb[172].mxu0 }
 0x4be   : > { %v2150_v39 = vpop.f32.mrb[173].mxu0 }
 0x4bf   : > { %2770 = vst [vmem:[%s4225_s26 + $0xe8] sm:$0xff] %v3098_v36  ;;  %v3091_v40 = vpack.c.bf16 %v2150_v39, %v2148_v38  ;;  %v2152_v0 = vpop.f32.mrb[174].mxu0 }
 0x4c0   : > { %v2154_v41 = vpop.f32.mrb[175].mxu0 }
 0x4c1   : > { %2763 = vst [vmem:[%s4225_s26 + $0xb0] sm:$0xff] %v3091_v40  ;;  %v3092_v42 = vpack.c.bf16 %v2154_v41, %v2152_v0  ;;  %v2188_v43 = vpop.f32.mrb[132].mxu1 }
 0x4c2   : > { %v2190_v44 = vpop.f32.mrb[133].mxu1 }
 0x4c3   : > { %2764 = vst [vmem:[%s4225_s26 + $0xb8] sm:$0xff] %v3092_v42  ;;  %v3099_v45 = vpack.c.bf16 %v2190_v44, %v2188_v43  ;;  %v2192_v46 = vpop.f32.mrb[134].mxu1 }
 0x4c4   : > { %v2194_v47 = vpop.f32.mrb[135].mxu1 }
 0x4c5   : > { %2771 = vst [vmem:[%s4225_s26 + $0xf0] sm:$0xff] %v3099_v45  ;;  %v3100_v48 = vpack.c.bf16 %v2194_v47, %v2192_v46  ;;  %v2158_v49 = vpop.f32.mrb[176].mxu0 }
 0x4c6   : > { %v2160_v50 = vpop.f32.mrb[177].mxu0 }
 0x4c7   : > { %2772 = vst [vmem:[%s4225_s26 + $0xf8] sm:$0xff] %v3100_v48  ;;  %v3093_v51 = vpack.c.bf16 %v2160_v50, %v2158_v49  ;;  %v2162_v52 = vpop.f32.mrb[178].mxu0 }
 0x4c8   : > { %v2164_v53 = vpop.f32.mrb[179].mxu0 }
 0x4c9   : > { %2765 = vst [vmem:[%s4225_s26 + $0xc0] sm:$0xff] %v3093_v51  ;;  %v3094_v54 = vpack.c.bf16 %v2164_v53, %v2162_v52  ;;  %v2198_v37 = vpop.f32.mrb[136].mxu1 }
 0x4ca   : > { %v2200_v55 = vpop.f32.mrb[137].mxu1 }
 0x4cb   : > { %2766 = vst [vmem:[%s4225_s26 + $0xc8] sm:$0xff] %v3094_v54  ;;  %v3101_v56 = vpack.c.bf16 %v2200_v55, %v2198_v37  ;;  %v2202_v57 = vpop.f32.mrb[138].mxu1 }
 0x4cc   : > { %v2204_v58 = vpop.f32.mrb[139].mxu1 }
 0x4cd   : > { %2773 = vst [vmem:[%s4225_s26 + $0x100] sm:$0xff] %v3101_v56  ;;  %v3102_v59 = vpack.c.bf16 %v2204_v58, %v2202_v57  ;;  %v2168_v60 = vpop.f32.mrb[180].mxu0 }
 0x4ce   : > { %v2170_v61 = vpop.f32.mrb[181].mxu0 }
 0x4cf   : > { %2774 = vst [vmem:[%s4225_s26 + $0x108] sm:$0xff] %v3102_v59  ;;  %v3095_v62 = vpack.c.bf16 %v2170_v61, %v2168_v60  ;;  %v2172_v63 = vpop.f32.mrb[182].mxu0 }
 0x4d0   : > { %v2174_v1 = vpop.f32.mrb[183].mxu0 }
 0x4d1   : > { %2767 = vst [vmem:[%s4225_s26 + $0xd0] sm:$0xff] %v3095_v62  ;;  %v3096_v2 = vpack.c.bf16 %v2174_v1, %v2172_v63  ;;  %v2208_v3 = vpop.f32.mrb[140].mxu1 }
 0x4d2   : > { %v2210_v4 = vpop.f32.mrb[141].mxu1 }
 0x4d3   : > { %2768 = vst [vmem:[%s4225_s26 + $0xd8] sm:$0xff] %v3096_v2  ;;  %v3103_v5 = vpack.c.bf16 %v2210_v4, %v2208_v3  ;;  %v2212_v6 = vpop.f32.mrb[142].mxu1 }
 0x4d4   : > { %v2214_v7 = vpop.f32.mrb[143].mxu1 }
 0x4d5   : > { %2775 = vst [vmem:[%s4225_s26 + $0x110] sm:$0xff] %v3103_v5  ;;  %v3104_v8 = vpack.c.bf16 %v2214_v7, %v2212_v6 }
 0x4d7   : > { %2776 = vst [vmem:[%s4225_s26 + $0x118] sm:$0xff] %v3104_v8 }
 0x4d9   : > { %v2218_v9 = vpop.f32.mrb[144].mxu1 }
 0x4da   : > { %v2220_v10 = vpop.f32.mrb[145].mxu1 }
 0x4db   : > { %v3105_v11 = vpack.c.bf16 %v2220_v10, %v2218_v9  ;;  %v2222_v12 = vpop.f32.mrb[146].mxu1 }
 0x4dc   : > { %v2224_v13 = vpop.f32.mrb[147].mxu1 }
 0x4dd   : > { %2777 = vst [vmem:[%s4225_s26 + $0x120] sm:$0xff] %v3105_v11  ;;  %v3106_v14 = vpack.c.bf16 %v2224_v13, %v2222_v12 }
 0x4df   : > { %2778 = vst [vmem:[%s4225_s26 + $0x128] sm:$0xff] %v3106_v14 }
 0x4e1   : > { %v2228_v15 = vpop.f32.mrb[148].mxu1 }
 0x4e2   : > { %v2230_v16 = vpop.f32.mrb[149].mxu1 }
 0x4e3   : > { %v3107_v17 = vpack.c.bf16 %v2230_v16, %v2228_v15  ;;  %v2232_v18 = vpop.f32.mrb[150].mxu1 }
 0x4e4   : > { %v2234_v19 = vpop.f32.mrb[151].mxu1 }
 0x4e5   : > { %2779 = vst [vmem:[%s4225_s26 + $0x130] sm:$0xff] %v3107_v17  ;;  %v3108_v20 = vpack.c.bf16 %v2234_v19, %v2232_v18 }
 0x4e7   : > { %2780 = vst [vmem:[%s4225_s26 + $0x138] sm:$0xff] %v3108_v20 }
 0x4e9   : > { %v2238_v21 = vpop.f32.mrb[152].mxu1 }
 0x4ea   : > { %v2240_v22 = vpop.f32.mrb[153].mxu1 }
 0x4eb   : > { %v3109_v23 = vpack.c.bf16 %v2240_v22, %v2238_v21  ;;  %v2242_v24 = vpop.f32.mrb[154].mxu1 }
 0x4ec   : > { %v2244_v25 = vpop.f32.mrb[155].mxu1 }
 0x4ed   : > { %2781 = vst [vmem:[%s4225_s26 + $0x140] sm:$0xff] %v3109_v23  ;;  %v3110_v26 = vpack.c.bf16 %v2244_v25, %v2242_v24 }
 0x4ef   : > { %2782 = vst [vmem:[%s4225_s26 + $0x148] sm:$0xff] %v3110_v26 }
 0x4f1   : > { %v2248_v27 = vpop.f32.mrb[156].mxu1 }
 0x4f2   : > { %v2250_v28 = vpop.f32.mrb[157].mxu1 }
 0x4f3   : > { %v3111_v29 = vpack.c.bf16 %v2250_v28, %v2248_v27  ;;  %v2252_v30 = vpop.f32.mrb[158].mxu1 }
 0x4f4   : > { %v2254_v31 = vpop.f32.mrb[159].mxu1 }
 0x4f5   : > { %2783 = vst [vmem:[%s4225_s26 + $0x150] sm:$0xff] %v3111_v29  ;;  %v3112_v32 = vpack.c.bf16 %v2254_v31, %v2252_v30 }
 0x4f7   : > { %2784 = vst [vmem:[%s4225_s26 + $0x158] sm:$0xff] %v3112_v32 }
 0x4f9   : > { %v2258_v33 = vpop.f32.mrb[160].mxu1 }
 0x4fa   : > { %v2260_v34 = vpop.f32.mrb[161].mxu1 }
 0x4fb   : > { %v3113_v35 = vpack.c.bf16 %v2260_v34, %v2258_v33  ;;  %v2262_v36 = vpop.f32.mrb[162].mxu1 }
 0x4fc   : > { %v2264_v38 = vpop.f32.mrb[163].mxu1 }
 0x4fd   : > { %2785 = vst [vmem:[%s4225_s26 + $0x160] sm:$0xff] %v3113_v35  ;;  %v3114_v39 = vpack.c.bf16 %v2264_v38, %v2262_v36 }
 0x4ff   : > { %2786 = vst [vmem:[%s4225_s26 + $0x168] sm:$0xff] %v3114_v39 }
 0x501   : > { %v2268_v40 = vpop.f32.mrb[164].mxu1 }
 0x502   : > { %v2270_v0 = vpop.f32.mrb[165].mxu1 }
 0x503   : > { %v3115_v41 = vpack.c.bf16 %v2270_v0, %v2268_v40  ;;  %v2272_v42 = vpop.f32.mrb[166].mxu1 }
 0x504   : > { %v2274_v43 = vpop.f32.mrb[167].mxu1 }
 0x505   : > { %2787 = vst [vmem:[%s4225_s26 + $0x170] sm:$0xff] %v3115_v41  ;;  %v3116_v44 = vpack.c.bf16 %v2274_v43, %v2272_v42 }
 0x507   : > { %2788 = vst [vmem:[%s4225_s26 + $0x178] sm:$0xff] %v3116_v44 }
 0x509   : > { %v2278_v45 = vpop.f32.mrb[168].mxu1 }
 0x50a   : > { %v2280_v46 = vpop.f32.mrb[169].mxu1 }
 0x50b   : > { %v3117_v47 = vpack.c.bf16 %v2280_v46, %v2278_v45  ;;  %v2282_v48 = vpop.f32.mrb[170].mxu1 }
 0x50c   : > { %v2284_v49 = vpop.f32.mrb[171].mxu1 }
 0x50d   : > { %2789 = vst [vmem:[%s4225_s26 + $0x180] sm:$0xff] %v3117_v47  ;;  %v3118_v50 = vpack.c.bf16 %v2284_v49, %v2282_v48 }
 0x50f   : > { %2790 = vst [vmem:[%s4225_s26 + $0x188] sm:$0xff] %v3118_v50 }
 0x511   : > { %v2288_v51 = vpop.f32.mrb[172].mxu1 }
 0x512   : > { %v2290_v52 = vpop.f32.mrb[173].mxu1 }
 0x513   : > { %v3119_v53 = vpack.c.bf16 %v2290_v52, %v2288_v51  ;;  %v2292_v54 = vpop.f32.mrb[174].mxu1 }
 0x514   : > { %v2294_v37 = vpop.f32.mrb[175].mxu1 }
 0x515   : > { %2791 = vst [vmem:[%s4225_s26 + $0x190] sm:$0xff] %v3119_v53  ;;  %v3120_v55 = vpack.c.bf16 %v2294_v37, %v2292_v54 }
 0x517   : > { %2792 = vst [vmem:[%s4225_s26 + $0x198] sm:$0xff] %v3120_v55 }
 0x519   : > { %v2298_v56 = vpop.f32.mrb[176].mxu1 }
 0x51a   : > { %v2300_v57 = vpop.f32.mrb[177].mxu1 }
 0x51b   : > { %v3121_v58 = vpack.c.bf16 %v2300_v57, %v2298_v56  ;;  %v2302_v59 = vpop.f32.mrb[178].mxu1 }
 0x51c   : > { %v2304_v60 = vpop.f32.mrb[179].mxu1 }
 0x51d   : > { %2793 = vst [vmem:[%s4225_s26 + $0x1a0] sm:$0xff] %v3121_v58  ;;  %v3122_v61 = vpack.c.bf16 %v2304_v60, %v2302_v59 }
 0x51f   : > { %2794 = vst [vmem:[%s4225_s26 + $0x1a8] sm:$0xff] %v3122_v61 }
 0x521   : > { %v2308_v62 = vpop.f32.mrb[180].mxu1 }
 0x522   : > { %v2310_v63 = vpop.f32.mrb[181].mxu1 }
 0x523   : > { %v3123_v1 = vpack.c.bf16 %v2310_v63, %v2308_v62  ;;  %v2312_v2 = vpop.f32.mrb[182].mxu1 }
 0x524   : > { %v2314_v3 = vpop.f32.mrb[183].mxu1 }
 0x525   : > { %2795 = vst [vmem:[%s4225_s26 + $0x1b0] sm:$0xff] %v3123_v1  ;;  %v3124_v4 = vpack.c.bf16 %v2314_v3, %v2312_v2 }
 0x527   : > { %2796 = vst [vmem:[%s4225_s26 + $0x1b8] sm:$0xff] %v3124_v4 }
 0x529   : > { %v2318_v5 = vpop.f32.mrb[184].mxu1 }
 0x52a   : > { %v2320_v6 = vpop.f32.mrb[185].mxu1 }
 0x52b   : > { %v3125_v7 = vpack.c.bf16 %v2320_v6, %v2318_v5  ;;  %v2322_v8 = vpop.f32.mrb[186].mxu1 }
 0x52c   : > { %v2324_v9 = vpop.f32.mrb[187].mxu1 }
 0x52d   : > { %2797 = vst [vmem:[%s4225_s26 + $0x1c0] sm:$0xff] %v3125_v7  ;;  %v3126_v10 = vpack.c.bf16 %v2324_v9, %v2322_v8 }
 0x52f   : > { %2798 = vst [vmem:[%s4225_s26 + $0x1c8] sm:$0xff] %v3126_v10 }
 0x531   : > { %v2328_v11 = vpop.f32.mrb[188].mxu1 }
 0x532   : > { %v2330_v12 = vpop.f32.mrb[189].mxu1 }
 0x533   : > { %v3127_v13 = vpack.c.bf16 %v2330_v12, %v2328_v11  ;;  %v2332_v14 = vpop.f32.mrb[190].mxu1 }
 0x534   : > { %v2334_v15 = vpop.f32.mrb[191].mxu1 }
 0x535   : > { %2799 = vst [vmem:[%s4225_s26 + $0x1d0] sm:$0xff] %v3127_v13  ;;  %v3128_v16 = vpack.c.bf16 %v2334_v15, %v2332_v14 }
 0x537   : > { %2800 = vst [vmem:[%s4225_s26 + $0x1d8] sm:$0xff] %v3128_v16 }
 0x539   : > { %v2338_v17 = vpop.f32.mrb[192].mxu1 }
 0x53a   : > { %v2340_v18 = vpop.f32.mrb[193].mxu1 }
 0x53b   : > { %v3129_v19 = vpack.c.bf16 %v2340_v18, %v2338_v17  ;;  %v2342_v20 = vpop.f32.mrb[194].mxu1 }
 0x53c   : > { %v2344_v21 = vpop.f32.mrb[195].mxu1 }
 0x53d   : > { %2801 = vst [vmem:[%s4225_s26 + $0x1e0] sm:$0xff] %v3129_v19  ;;  %v3130_v22 = vpack.c.bf16 %v2344_v21, %v2342_v20 }
 0x53f   : > { %2802 = vst [vmem:[%s4225_s26 + $0x1e8] sm:$0xff] %v3130_v22 }
 0x541   : > { %v2348_v23 = vpop.f32.mrb[196].mxu1 }
 0x542   : > { %v2350_v24 = vpop.f32.mrb[197].mxu1 }
 0x543   : > { %v3131_v25 = vpack.c.bf16 %v2350_v24, %v2348_v23  ;;  %v2352_v26 = vpop.f32.mrb[198].mxu1 }
 0x544   : > { %v2354_v27 = vpop.f32.mrb[199].mxu1 }
 0x545   : > { %2803 = vst [vmem:[%s4225_s26 + $0x1f0] sm:$0xff] %v3131_v25  ;;  %v3132_v28 = vpack.c.bf16 %v2354_v27, %v2352_v26 }
 0x547   : > { %2804 = vst [vmem:[%s4225_s26 + $0x1f8] sm:$0xff] %v3132_v28 }
 0x548   : > { %3698 = shalt.err (!%p3695_p13)
}
 0x549   : > { %s3699_s16 = scalar_lea.hbm %s4294_s29, 8192  ;;  %s3703_s30 = scalar_lea.hbm %s4347_s5, 16384 }
 0x54a   : > { %p3700_p9 = scmp.ne.s32.totalorder %s4294_s29, %s3699_s16  ;;  %p3704_p4 = scmp.lt.u32.totalorder %s4294_s29, %s4347_s5 }
 0x54b   : > { %p3705_p8 = scmp.lt.u32.totalorder %s3703_s30, %s3699_s16  ;;  %p3707_p10 = scmp.lt.u32.totalorder %s3699_s16, %s4294_s29 }
 0x54c   : > { %p3701_p0 = pnand %p3700_p9, %p3977_p3 }
 0x54d   : > { %p3706_p6 = por %p3705_p8, %p3704_p4 }
 0x54e   : > { %p3702_p11 = pneg %p3701_p0 }
 0x54f   : > { %p3708_p5 = por %p3707_p10, %p3706_p6 }
 0x551   : > { %p3709_p7 = pnand %p3708_p5, %p3702_p11 }
 0x553   : > { %3712 = shalt.err (!%p3709_p7)
}
 0x554   : > { %s3774_s13 = smov 128   ;;  %s3775_s23 = smov 8  }
 0x555   : > { %3409 = dma.vmem_to_hbm [thread:$0]  (%p3977_p3), %s4296_s8, 8192, %s4294_s29, %s2806_s11, %s3774_s13, %s3774_s13, %s3775_s23  }
 0x556 PF: > { %s2835_s14 = sand.u32 1, %s3747_s18   ;;  %p4365_p12 = scmp.ne.s32.totalorder %s4352_s25, 0 }
 0x557   : > { %p4366_p1 = scmp.ge.s32.totalorder %s3759_s21, 2  ;;  %s2836_s22 = scalar_lea.sflag [#allocation4], %s2835_s14 }
 0x559   : > { %p3429_p2 = pnand %p4366_p1, %p4365_p12 }
 0x55b   : > { %3742 = dma.done.wait (!%p3429_p2), %s2836_s22, 8192  }
 0x55c   : > { %3744 = vsyncadd (!%p3429_p2), %s2836_s22, 4294959104  ;;  %p20_p13 = scmp.ge.s32.totalorder %s3964_s6, 4   ;;  %s4367_s18 = smov %s3751_s19 }
 0x55d   : > { %s4368_s19 = smov %s3755_s20  ;;  %s4369_s20 = smov %s3973_s7 }
 0x55e   : > { %s4370_s21 = smov %s3964_s6  ;;  %22 = sbr.rel (!%p20_p13) target bundleno = 7 (0x7), region = 101 }
 0x565   :  { %2841 = vsyncpa [#allocation3], 1 }
 0x566   :  { %2843 = vsyncpa [#allocation3 + $0x1], 1 }
 0x567   :  { %2844 = vsyncpa [#allocation6], 1 }
 0x568   :  { %2845 = vsyncpa [#allocation9], 1 }
 0x569   :  { %2846 = vsyncpa [#allocation4], 1 }
 0x56a   :  { %2848 = vsyncpa [#allocation4 + $0x1], 1 }

</bundles_post_ra>
